<compile_context>
chip_gen: v6e
topology: v6e:2x2x1
jax: 0.10.0
libtpu: 0.0.40
codegen_flags: <defaults>
</compile_context>

<pallas_src>
import functools

import numpy as np

import jax
import jax.numpy as jnp
from jax.experimental import pallas as pl
from jax.experimental.pallas import tpu as pltpu


KSIZE = 3
STRIDE = 2
CONV_CH = 32
HIDDEN = 128


def _round8(v):
    return ((v + 7) // 8) * 8


# ----------------------------------------------------------------------------
# Fused kernel: entire encoder + DQN forward in a single VMEM-resident pass.
# All refs are full-array VMEM blocks (no grid); shapes are tiny.
# ----------------------------------------------------------------------------
def _bc_fused_kernel(p1_ref, w1_ref, b1_ref,
                     s2_ref, w2_ref, b2_ref,
                     pe_ref, we_ref, be_ref,
                     wd1_ref, bd1_ref, wd2_ref, bd2_ref, wd3_ref, bd3_ref,
                     o_ref, *, num_taps, num_spatial):
    f32 = jnp.float32

    # ---- conv1: pre-gathered im2col patches @ W1 + b1, ReLU ------------------
    h1 = jnp.dot(p1_ref[...], w1_ref[...], preferred_element_type=f32)
    h1 = jnp.maximum(h1 + b1_ref[...], 0.0)                 # (M1p, 32)

    # ---- conv2: im2col-as-matmul; sum over the 9 taps ------------------------
    # s2[t] is a constant 0/1 row-selection matrix (M2p, M1p); w2[t] is the
    # (Cin, Cout) slice of the conv2 weight for tap t.  Padded rows of h1 are
    # never selected, so zero-padding garbage cannot propagate.
    acc2 = jnp.dot(jnp.dot(s2_ref[0], h1, preferred_element_type=f32),
                   w2_ref[0], preferred_element_type=f32)
    for t in range(1, num_taps):
        acc2 = acc2 + jnp.dot(
            jnp.dot(s2_ref[t], h1, preferred_element_type=f32),
            w2_ref[t], preferred_element_type=f32)
    h2 = jnp.maximum(acc2 + b2_ref[...], 0.0)                # (M2p, 32)

    # ---- encoder head: flatten(spatial, channel) . Wenc as a spatial-tap sum -
    z = jnp.dot(jnp.dot(pe_ref[0], h2, preferred_element_type=f32),
                we_ref[0], preferred_element_type=f32)
    for p in range(1, num_spatial):
        z = z + jnp.dot(
            jnp.dot(pe_ref[p], h2, preferred_element_type=f32),
            we_ref[p], preferred_element_type=f32)
    z = z + be_ref[...]                                      # (Np, latent)

    # ---- DQN MLP -------------------------------------------------------------
    h = jnp.maximum(jnp.dot(z, wd1_ref[...], preferred_element_type=f32)
                    + bd1_ref[...], 0.0)
    h = jnp.maximum(jnp.dot(h, wd2_ref[...], preferred_element_type=f32)
                    + bd2_ref[...], 0.0)
    q = jnp.dot(h, wd3_ref[...], preferred_element_type=f32) + bd3_ref[...]
    o_ref[...] = q.astype(o_ref.dtype)                       # (Np, 128) lane-dense


# ----------------------------------------------------------------------------
# Trace-time constants: 0/1 selection matrices (built with numpy, become XLA
# constants under jit — zero per-call host work).
# ----------------------------------------------------------------------------
def _conv2_selection(N, H1, W1, H2, W2, M2p, M1p):
    s = np.zeros((KSIZE * KSIZE, M2p, M1p), np.float32)
    for n in range(N):
        for yo in range(H2):
            for xo in range(W2):
                r = (n * H2 + yo) * W2 + xo
                for i in range(KSIZE):
                    for j in range(KSIZE):
                        src = (n * H1 + STRIDE * yo + i) * W1 + (STRIDE * xo + j)
                        s[i * KSIZE + j, r, src] = 1.0
    return s


def _flatten_selection(N, H2, W2, Np, M2p):
    P = H2 * W2
    s = np.zeros((P, Np, M2p), np.float32)
    for n in range(N):
        for p in range(P):
            s[p, n, n * P + p] = 1.0
    return s


# ----------------------------------------------------------------------------
# Parameter init: weights stored in their kernel-ready layout (pre-transposed,
# pre-split per tap, pre-padded), biases as (1, N).
# ----------------------------------------------------------------------------
def init_params(key, obs_shape, action_dim, latent_dim, hidden=HIDDEN):
    C, H, W = obs_shape
    H1, W1 = (H - KSIZE) // STRIDE + 1, (W - KSIZE) // STRIDE + 1
    H2, W2 = (H1 - KSIZE) // STRIDE + 1, (W1 - KSIZE) // STRIDE + 1
    flat_dim = CONV_CH * H2 * W2
    k1, k2, k3, k4, k5, k6 = jax.random.split(key, 6)

    def uni(k, shape, fan_in):
        s = 1.0 / np.sqrt(fan_in)
        return jax.random.uniform(k, shape, jnp.float32, -s, s)

    K1 = C * KSIZE * KSIZE
    K1p = _round8(K1)
    # conv1 weight as (K1p, 32) matrix (feature order (kh, kw, Cin), zero-padded K)
    w1 = jnp.zeros((K1p, CONV_CH), jnp.float32).at[:K1].set(uni(k1, (K1, CONV_CH), K1))
    b1 = jnp.zeros((1, CONV_CH), jnp.float32)
    # conv2 weight as per-tap (Cin, Cout) matrices
    w2 = uni(k2, (KSIZE * KSIZE, CONV_CH, CONV_CH), CONV_CH * KSIZE * KSIZE)
    b2 = jnp.zeros((1, CONV_CH), jnp.float32)
    # encoder head, split per spatial position (channels-last flatten order)
    wenc = uni(k3, (H2 * W2, CONV_CH, latent_dim), flat_dim)
    benc = jnp.zeros((1, latent_dim), jnp.float32)
    # DQN MLP; final layer padded to 128 output lanes (extra cols/bias are zero)
    wd1 = uni(k4, (latent_dim, hidden), latent_dim)
    bd1 = jnp.zeros((1, hidden), jnp.float32)
    wd2 = uni(k5, (hidden, hidden), hidden)
    bd2 = jnp.zeros((1, hidden), jnp.float32)
    a_pad = max(128, _round8(action_dim))
    wd3 = jnp.zeros((hidden, a_pad), jnp.float32).at[:, :action_dim].set(
        uni(k6, (hidden, action_dim), hidden))
    bd3 = jnp.zeros((1, a_pad), jnp.float32)

    return dict(w1=w1, b1=b1, w2=w2, b2=b2, wenc=wenc, benc=benc,
                wd1=wd1, bd1=bd1, wd2=wd2, bd2=bd2, wd3=wd3, bd3=bd3)


# ----------------------------------------------------------------------------
# Forward: NCHW input -> (N, action_dim) Q values.  One pallas_call.
# ----------------------------------------------------------------------------
@functools.partial(jax.jit, static_argnames=("action_dim",))
def behavioral_cloning_forward(params, x_nchw, *, action_dim):
    N, C, H, W = x_nchw.shape
    H1, W1 = (H - KSIZE) // STRIDE + 1, (W - KSIZE) // STRIDE + 1
    H2, W2 = (H1 - KSIZE) // STRIDE + 1, (W1 - KSIZE) // STRIDE + 1
    M1, M2 = N * H1 * W1, N * H2 * W2
    M1p, M2p, Np = _round8(M1), _round8(M2), _round8(N)
    K1 = C * KSIZE * KSIZE
    K1p = params["w1"].shape[0]
    out_lanes = params["wd3"].shape[1]

    # conv1 im2col on the raw input: tiny strided slices, fused by XLA under jit.
    xh = jnp.transpose(x_nchw, (0, 2, 3, 1))                  # NHWC
    cols = [xh[:, i:i + STRIDE * H1:STRIDE, j:j + STRIDE * W1:STRIDE, :]
            for i in range(KSIZE) for j in range(KSIZE)]
    patches = jnp.concatenate(cols, axis=-1).reshape(M1, K1)  # (M1, 27)
    patches = jnp.pad(patches, ((0, M1p - M1), (0, K1p - K1)))  # (M1p, 32)

    s2 = jnp.asarray(_conv2_selection(N, H1, W1, H2, W2, M2p, M1p))
    pe = jnp.asarray(_flatten_selection(N, H2, W2, Np, M2p))

    kernel = functools.partial(_bc_fused_kernel,
                               num_taps=KSIZE * KSIZE,
                               num_spatial=H2 * W2)
    vmem = pl.BlockSpec(memory_space=pltpu.MemorySpace.VMEM)
    q_pad = pl.pallas_call(
        kernel,
        out_shape=jax.ShapeDtypeStruct((Np, out_lanes), jnp.float32),
        in_specs=[vmem] * 15,
        out_specs=vmem,
    )(patches, params["w1"], params["b1"],
      s2, params["w2"], params["b2"],
      pe, params["wenc"], params["benc"],
      params["wd1"], params["bd1"],
      params["wd2"], params["bd2"],
      params["wd3"], params["bd3"])

    return q_pad[:N, :action_dim]


if __name__ == "__main__":
    key = jax.random.PRNGKey(0)
    k_param, k_x = jax.random.split(key)

    obs_shape = (3, 16, 16)     # (C, H, W)
    action_dim = 4
    latent_dim = 32
    batch = 2

    params = init_params(k_param, obs_shape, action_dim, latent_dim)
    x = jax.random.normal(k_x, (batch,) + obs_shape, dtype=jnp.float32)

    q_values = behavioral_cloning_forward(params, x, action_dim=action_dim)
    q_values = jax.block_until_ready(q_values)
    assert q_values.shape == (batch, action_dim)
    assert bool(jnp.all(jnp.isfinite(q_values)))
    print("KERNEL_OK")
</pallas_src>

<mosaic_0001>
module attributes {stable_mosaic.version = 11 : i64} {
  func.func @_bc_fused_kernel(%arg0: memref<104x32xf32, #tpu.memory_space<vmem>>, %arg1: memref<32x32xf32, #tpu.memory_space<vmem>>, %arg2: memref<1x32xf32, #tpu.memory_space<vmem>>, %arg3: memref<9x24x104xf32, #tpu.memory_space<vmem>>, %arg4: memref<9x32x32xf32, #tpu.memory_space<vmem>>, %arg5: memref<1x32xf32, #tpu.memory_space<vmem>>, %arg6: memref<9x8x24xf32, #tpu.memory_space<vmem>>, %arg7: memref<9x32x32xf32, #tpu.memory_space<vmem>>, %arg8: memref<1x32xf32, #tpu.memory_space<vmem>>, %arg9: memref<32x128xf32, #tpu.memory_space<vmem>>, %arg10: memref<1x128xf32, #tpu.memory_space<vmem>>, %arg11: memref<128x128xf32, #tpu.memory_space<vmem>>, %arg12: memref<1x128xf32, #tpu.memory_space<vmem>>, %arg13: memref<128x128xf32, #tpu.memory_space<vmem>>, %arg14: memref<1x128xf32, #tpu.memory_space<vmem>>, %arg15: memref<8x128xf32, #tpu.memory_space<vmem>>) attributes {dimension_semantics = [], scalar_prefetch = 0 : i64, scratch_operands = 0 : i64, tpu.core_type = #tpu.core_type<tc>} {
    %c0 = arith.constant 0 : index
    %c0_0 = arith.constant 0 : index
    %0 = vector.load %arg0[%c0, %c0_0] : memref<104x32xf32, #tpu.memory_space<vmem>>, vector<104x32xf32>
    %c0_1 = arith.constant 0 : index
    %c0_2 = arith.constant 0 : index
    %1 = vector.load %arg1[%c0_1, %c0_2] : memref<32x32xf32, #tpu.memory_space<vmem>>, vector<32x32xf32>
    %cst = arith.constant dense<0.000000e+00> : vector<104x32xf32>
    %2 = tpu.matmul %0, %1, %cst {dimension_numbers = #tpu.dot_dimension_numbers<[1], [0], [0], [1], [0, 0, 1, 1], [], []>} : vector<104x32xf32>, vector<32x32xf32>, vector<104x32xf32> -> vector<104x32xf32>
    %c0_3 = arith.constant 0 : index
    %c0_4 = arith.constant 0 : index
    %3 = vector.load %arg2[%c0_3, %c0_4] : memref<1x32xf32, #tpu.memory_space<vmem>>, vector<1x32xf32>
    %4 = vector.broadcast %3 : vector<1x32xf32> to vector<104x32xf32>
    %5 = arith.addf %2, %4 : vector<104x32xf32>
    %cst_5 = arith.constant 0.000000e+00 : f32
    %6 = vector.broadcast %cst_5 : f32 to vector<104x32xf32>
    %7 = arith.maximumf %5, %6 : vector<104x32xf32>
    %c0_6 = arith.constant 0 : index
    %c0_7 = arith.constant 0 : index
    %c0_8 = arith.constant 0 : index
    %8 = vector.load %arg3[%c0_6, %c0_7, %c0_8] : memref<9x24x104xf32, #tpu.memory_space<vmem>>, vector<1x24x104xf32>
    %9 = vector.shape_cast %8 : vector<1x24x104xf32> to vector<24x104xf32>
    %cst_9 = arith.constant dense<0.000000e+00> : vector<24x32xf32>
    %10 = tpu.matmul %9, %7, %cst_9 {dimension_numbers = #tpu.dot_dimension_numbers<[1], [0], [0], [1], [0, 0, 1, 1], [], []>} : vector<24x104xf32>, vector<104x32xf32>, vector<24x32xf32> -> vector<24x32xf32>
    %c0_10 = arith.constant 0 : index
    %c0_11 = arith.constant 0 : index
    %c0_12 = arith.constant 0 : index
    %11 = vector.load %arg4[%c0_10, %c0_11, %c0_12] : memref<9x32x32xf32, #tpu.memory_space<vmem>>, vector<1x32x32xf32>
    %12 = vector.shape_cast %11 : vector<1x32x32xf32> to vector<32x32xf32>
    %cst_13 = arith.constant dense<0.000000e+00> : vector<24x32xf32>
    %13 = tpu.matmul %10, %12, %cst_13 {dimension_numbers = #tpu.dot_dimension_numbers<[1], [0], [0], [1], [0, 0, 1, 1], [], []>} : vector<24x32xf32>, vector<32x32xf32>, vector<24x32xf32> -> vector<24x32xf32>
    %c1 = arith.constant 1 : index
    %c0_14 = arith.constant 0 : index
    %c0_15 = arith.constant 0 : index
    %14 = vector.load %arg3[%c1, %c0_14, %c0_15] : memref<9x24x104xf32, #tpu.memory_space<vmem>>, vector<1x24x104xf32>
    %15 = vector.shape_cast %14 : vector<1x24x104xf32> to vector<24x104xf32>
    %cst_16 = arith.constant dense<0.000000e+00> : vector<24x32xf32>
    %16 = tpu.matmul %15, %7, %cst_16 {dimension_numbers = #tpu.dot_dimension_numbers<[1], [0], [0], [1], [0, 0, 1, 1], [], []>} : vector<24x104xf32>, vector<104x32xf32>, vector<24x32xf32> -> vector<24x32xf32>
    %c1_17 = arith.constant 1 : index
    %c0_18 = arith.constant 0 : index
    %c0_19 = arith.constant 0 : index
    %17 = vector.load %arg4[%c1_17, %c0_18, %c0_19] : memref<9x32x32xf32, #tpu.memory_space<vmem>>, vector<1x32x32xf32>
    %18 = vector.shape_cast %17 : vector<1x32x32xf32> to vector<32x32xf32>
    %cst_20 = arith.constant dense<0.000000e+00> : vector<24x32xf32>
    %19 = tpu.matmul %16, %18, %cst_20 {dimension_numbers = #tpu.dot_dimension_numbers<[1], [0], [0], [1], [0, 0, 1, 1], [], []>} : vector<24x32xf32>, vector<32x32xf32>, vector<24x32xf32> -> vector<24x32xf32>
    %20 = arith.addf %13, %19 : vector<24x32xf32>
    %c2 = arith.constant 2 : index
    %c0_21 = arith.constant 0 : index
    %c0_22 = arith.constant 0 : index
    %21 = vector.load %arg3[%c2, %c0_21, %c0_22] : memref<9x24x104xf32, #tpu.memory_space<vmem>>, vector<1x24x104xf32>
    %22 = vector.shape_cast %21 : vector<1x24x104xf32> to vector<24x104xf32>
    %cst_23 = arith.constant dense<0.000000e+00> : vector<24x32xf32>
    %23 = tpu.matmul %22, %7, %cst_23 {dimension_numbers = #tpu.dot_dimension_numbers<[1], [0], [0], [1], [0, 0, 1, 1], [], []>} : vector<24x104xf32>, vector<104x32xf32>, vector<24x32xf32> -> vector<24x32xf32>
    %c2_24 = arith.constant 2 : index
    %c0_25 = arith.constant 0 : index
    %c0_26 = arith.constant 0 : index
    %24 = vector.load %arg4[%c2_24, %c0_25, %c0_26] : memref<9x32x32xf32, #tpu.memory_space<vmem>>, vector<1x32x32xf32>
    %25 = vector.shape_cast %24 : vector<1x32x32xf32> to vector<32x32xf32>
    %cst_27 = arith.constant dense<0.000000e+00> : vector<24x32xf32>
    %26 = tpu.matmul %23, %25, %cst_27 {dimension_numbers = #tpu.dot_dimension_numbers<[1], [0], [0], [1], [0, 0, 1, 1], [], []>} : vector<24x32xf32>, vector<32x32xf32>, vector<24x32xf32> -> vector<24x32xf32>
    %27 = arith.addf %20, %26 : vector<24x32xf32>
    %c3 = arith.constant 3 : index
    %c0_28 = arith.constant 0 : index
    %c0_29 = arith.constant 0 : index
    %28 = vector.load %arg3[%c3, %c0_28, %c0_29] : memref<9x24x104xf32, #tpu.memory_space<vmem>>, vector<1x24x104xf32>
    %29 = vector.shape_cast %28 : vector<1x24x104xf32> to vector<24x104xf32>
    %cst_30 = arith.constant dense<0.000000e+00> : vector<24x32xf32>
    %30 = tpu.matmul %29, %7, %cst_30 {dimension_numbers = #tpu.dot_dimension_numbers<[1], [0], [0], [1], [0, 0, 1, 1], [], []>} : vector<24x104xf32>, vector<104x32xf32>, vector<24x32xf32> -> vector<24x32xf32>
    %c3_31 = arith.constant 3 : index
    %c0_32 = arith.constant 0 : index
    %c0_33 = arith.constant 0 : index
    %31 = vector.load %arg4[%c3_31, %c0_32, %c0_33] : memref<9x32x32xf32, #tpu.memory_space<vmem>>, vector<1x32x32xf32>
    %32 = vector.shape_cast %31 : vector<1x32x32xf32> to vector<32x32xf32>
    %cst_34 = arith.constant dense<0.000000e+00> : vector<24x32xf32>
    %33 = tpu.matmul %30, %32, %cst_34 {dimension_numbers = #tpu.dot_dimension_numbers<[1], [0], [0], [1], [0, 0, 1, 1], [], []>} : vector<24x32xf32>, vector<32x32xf32>, vector<24x32xf32> -> vector<24x32xf32>
    %34 = arith.addf %27, %33 : vector<24x32xf32>
    %c4 = arith.constant 4 : index
    %c0_35 = arith.constant 0 : index
    %c0_36 = arith.constant 0 : index
    %35 = vector.load %arg3[%c4, %c0_35, %c0_36] : memref<9x24x104xf32, #tpu.memory_space<vmem>>, vector<1x24x104xf32>
    %36 = vector.shape_cast %35 : vector<1x24x104xf32> to vector<24x104xf32>
    %cst_37 = arith.constant dense<0.000000e+00> : vector<24x32xf32>
    %37 = tpu.matmul %36, %7, %cst_37 {dimension_numbers = #tpu.dot_dimension_numbers<[1], [0], [0], [1], [0, 0, 1, 1], [], []>} : vector<24x104xf32>, vector<104x32xf32>, vector<24x32xf32> -> vector<24x32xf32>
    %c4_38 = arith.constant 4 : index
    %c0_39 = arith.constant 0 : index
    %c0_40 = arith.constant 0 : index
    %38 = vector.load %arg4[%c4_38, %c0_39, %c0_40] : memref<9x32x32xf32, #tpu.memory_space<vmem>>, vector<1x32x32xf32>
    %39 = vector.shape_cast %38 : vector<1x32x32xf32> to vector<32x32xf32>
    %cst_41 = arith.constant dense<0.000000e+00> : vector<24x32xf32>
    %40 = tpu.matmul %37, %39, %cst_41 {dimension_numbers = #tpu.dot_dimension_numbers<[1], [0], [0], [1], [0, 0, 1, 1], [], []>} : vector<24x32xf32>, vector<32x32xf32>, vector<24x32xf32> -> vector<24x32xf32>
    %41 = arith.addf %34, %40 : vector<24x32xf32>
    %c5 = arith.constant 5 : index
    %c0_42 = arith.constant 0 : index
    %c0_43 = arith.constant 0 : index
    %42 = vector.load %arg3[%c5, %c0_42, %c0_43] : memref<9x24x104xf32, #tpu.memory_space<vmem>>, vector<1x24x104xf32>
    %43 = vector.shape_cast %42 : vector<1x24x104xf32> to vector<24x104xf32>
    %cst_44 = arith.constant dense<0.000000e+00> : vector<24x32xf32>
    %44 = tpu.matmul %43, %7, %cst_44 {dimension_numbers = #tpu.dot_dimension_numbers<[1], [0], [0], [1], [0, 0, 1, 1], [], []>} : vector<24x104xf32>, vector<104x32xf32>, vector<24x32xf32> -> vector<24x32xf32>
    %c5_45 = arith.constant 5 : index
    %c0_46 = arith.constant 0 : index
    %c0_47 = arith.constant 0 : index
    %45 = vector.load %arg4[%c5_45, %c0_46, %c0_47] : memref<9x32x32xf32, #tpu.memory_space<vmem>>, vector<1x32x32xf32>
    %46 = vector.shape_cast %45 : vector<1x32x32xf32> to vector<32x32xf32>
    %cst_48 = arith.constant dense<0.000000e+00> : vector<24x32xf32>
    %47 = tpu.matmul %44, %46, %cst_48 {dimension_numbers = #tpu.dot_dimension_numbers<[1], [0], [0], [1], [0, 0, 1, 1], [], []>} : vector<24x32xf32>, vector<32x32xf32>, vector<24x32xf32> -> vector<24x32xf32>
    %48 = arith.addf %41, %47 : vector<24x32xf32>
    %c6 = arith.constant 6 : index
    %c0_49 = arith.constant 0 : index
    %c0_50 = arith.constant 0 : index
    %49 = vector.load %arg3[%c6, %c0_49, %c0_50] : memref<9x24x104xf32, #tpu.memory_space<vmem>>, vector<1x24x104xf32>
    %50 = vector.shape_cast %49 : vector<1x24x104xf32> to vector<24x104xf32>
    %cst_51 = arith.constant dense<0.000000e+00> : vector<24x32xf32>
    %51 = tpu.matmul %50, %7, %cst_51 {dimension_numbers = #tpu.dot_dimension_numbers<[1], [0], [0], [1], [0, 0, 1, 1], [], []>} : vector<24x104xf32>, vector<104x32xf32>, vector<24x32xf32> -> vector<24x32xf32>
    %c6_52 = arith.constant 6 : index
    %c0_53 = arith.constant 0 : index
    %c0_54 = arith.constant 0 : index
    %52 = vector.load %arg4[%c6_52, %c0_53, %c0_54] : memref<9x32x32xf32, #tpu.memory_space<vmem>>, vector<1x32x32xf32>
    %53 = vector.shape_cast %52 : vector<1x32x32xf32> to vector<32x32xf32>
    %cst_55 = arith.constant dense<0.000000e+00> : vector<24x32xf32>
    %54 = tpu.matmul %51, %53, %cst_55 {dimension_numbers = #tpu.dot_dimension_numbers<[1], [0], [0], [1], [0, 0, 1, 1], [], []>} : vector<24x32xf32>, vector<32x32xf32>, vector<24x32xf32> -> vector<24x32xf32>
    %55 = arith.addf %48, %54 : vector<24x32xf32>
    %c7 = arith.constant 7 : index
    %c0_56 = arith.constant 0 : index
    %c0_57 = arith.constant 0 : index
    %56 = vector.load %arg3[%c7, %c0_56, %c0_57] : memref<9x24x104xf32, #tpu.memory_space<vmem>>, vector<1x24x104xf32>
    %57 = vector.shape_cast %56 : vector<1x24x104xf32> to vector<24x104xf32>
    %cst_58 = arith.constant dense<0.000000e+00> : vector<24x32xf32>
    %58 = tpu.matmul %57, %7, %cst_58 {dimension_numbers = #tpu.dot_dimension_numbers<[1], [0], [0], [1], [0, 0, 1, 1], [], []>} : vector<24x104xf32>, vector<104x32xf32>, vector<24x32xf32> -> vector<24x32xf32>
    %c7_59 = arith.constant 7 : index
    %c0_60 = arith.constant 0 : index
    %c0_61 = arith.constant 0 : index
    %59 = vector.load %arg4[%c7_59, %c0_60, %c0_61] : memref<9x32x32xf32, #tpu.memory_space<vmem>>, vector<1x32x32xf32>
    %60 = vector.shape_cast %59 : vector<1x32x32xf32> to vector<32x32xf32>
    %cst_62 = arith.constant dense<0.000000e+00> : vector<24x32xf32>
    %61 = tpu.matmul %58, %60, %cst_62 {dimension_numbers = #tpu.dot_dimension_numbers<[1], [0], [0], [1], [0, 0, 1, 1], [], []>} : vector<24x32xf32>, vector<32x32xf32>, vector<24x32xf32> -> vector<24x32xf32>
    %62 = arith.addf %55, %61 : vector<24x32xf32>
    %c8 = arith.constant 8 : index
    %c0_63 = arith.constant 0 : index
    %c0_64 = arith.constant 0 : index
    %63 = vector.load %arg3[%c8, %c0_63, %c0_64] : memref<9x24x104xf32, #tpu.memory_space<vmem>>, vector<1x24x104xf32>
    %64 = vector.shape_cast %63 : vector<1x24x104xf32> to vector<24x104xf32>
    %cst_65 = arith.constant dense<0.000000e+00> : vector<24x32xf32>
    %65 = tpu.matmul %64, %7, %cst_65 {dimension_numbers = #tpu.dot_dimension_numbers<[1], [0], [0], [1], [0, 0, 1, 1], [], []>} : vector<24x104xf32>, vector<104x32xf32>, vector<24x32xf32> -> vector<24x32xf32>
    %c8_66 = arith.constant 8 : index
    %c0_67 = arith.constant 0 : index
    %c0_68 = arith.constant 0 : index
    %66 = vector.load %arg4[%c8_66, %c0_67, %c0_68] : memref<9x32x32xf32, #tpu.memory_space<vmem>>, vector<1x32x32xf32>
    %67 = vector.shape_cast %66 : vector<1x32x32xf32> to vector<32x32xf32>
    %cst_69 = arith.constant dense<0.000000e+00> : vector<24x32xf32>
    %68 = tpu.matmul %65, %67, %cst_69 {dimension_numbers = #tpu.dot_dimension_numbers<[1], [0], [0], [1], [0, 0, 1, 1], [], []>} : vector<24x32xf32>, vector<32x32xf32>, vector<24x32xf32> -> vector<24x32xf32>
    %69 = arith.addf %62, %68 : vector<24x32xf32>
    %c0_70 = arith.constant 0 : index
    %c0_71 = arith.constant 0 : index
    %70 = vector.load %arg5[%c0_70, %c0_71] : memref<1x32xf32, #tpu.memory_space<vmem>>, vector<1x32xf32>
    %71 = vector.broadcast %70 : vector<1x32xf32> to vector<24x32xf32>
    %72 = arith.addf %69, %71 : vector<24x32xf32>
    %cst_72 = arith.constant 0.000000e+00 : f32
    %73 = vector.broadcast %cst_72 : f32 to vector<24x32xf32>
    %74 = arith.maximumf %72, %73 : vector<24x32xf32>
    %c0_73 = arith.constant 0 : index
    %c0_74 = arith.constant 0 : index
    %c0_75 = arith.constant 0 : index
    %75 = vector.load %arg6[%c0_73, %c0_74, %c0_75] : memref<9x8x24xf32, #tpu.memory_space<vmem>>, vector<1x8x24xf32>
    %76 = vector.shape_cast %75 : vector<1x8x24xf32> to vector<8x24xf32>
    %cst_76 = arith.constant dense<0.000000e+00> : vector<8x32xf32>
    %77 = tpu.matmul %76, %74, %cst_76 {dimension_numbers = #tpu.dot_dimension_numbers<[1], [0], [0], [1], [0, 0, 1, 1], [], []>} : vector<8x24xf32>, vector<24x32xf32>, vector<8x32xf32> -> vector<8x32xf32>
    %c0_77 = arith.constant 0 : index
    %c0_78 = arith.constant 0 : index
    %c0_79 = arith.constant 0 : index
    %78 = vector.load %arg7[%c0_77, %c0_78, %c0_79] : memref<9x32x32xf32, #tpu.memory_space<vmem>>, vector<1x32x32xf32>
    %79 = vector.shape_cast %78 : vector<1x32x32xf32> to vector<32x32xf32>
    %cst_80 = arith.constant dense<0.000000e+00> : vector<8x32xf32>
    %80 = tpu.matmul %77, %79, %cst_80 {dimension_numbers = #tpu.dot_dimension_numbers<[1], [0], [0], [1], [0, 0, 1, 1], [], []>} : vector<8x32xf32>, vector<32x32xf32>, vector<8x32xf32> -> vector<8x32xf32>
    %c1_81 = arith.constant 1 : index
    %c0_82 = arith.constant 0 : index
    %c0_83 = arith.constant 0 : index
    %81 = vector.load %arg6[%c1_81, %c0_82, %c0_83] : memref<9x8x24xf32, #tpu.memory_space<vmem>>, vector<1x8x24xf32>
    %82 = vector.shape_cast %81 : vector<1x8x24xf32> to vector<8x24xf32>
    %cst_84 = arith.constant dense<0.000000e+00> : vector<8x32xf32>
    %83 = tpu.matmul %82, %74, %cst_84 {dimension_numbers = #tpu.dot_dimension_numbers<[1], [0], [0], [1], [0, 0, 1, 1], [], []>} : vector<8x24xf32>, vector<24x32xf32>, vector<8x32xf32> -> vector<8x32xf32>
    %c1_85 = arith.constant 1 : index
    %c0_86 = arith.constant 0 : index
    %c0_87 = arith.constant 0 : index
    %84 = vector.load %arg7[%c1_85, %c0_86, %c0_87] : memref<9x32x32xf32, #tpu.memory_space<vmem>>, vector<1x32x32xf32>
    %85 = vector.shape_cast %84 : vector<1x32x32xf32> to vector<32x32xf32>
    %cst_88 = arith.constant dense<0.000000e+00> : vector<8x32xf32>
    %86 = tpu.matmul %83, %85, %cst_88 {dimension_numbers = #tpu.dot_dimension_numbers<[1], [0], [0], [1], [0, 0, 1, 1], [], []>} : vector<8x32xf32>, vector<32x32xf32>, vector<8x32xf32> -> vector<8x32xf32>
    %87 = arith.addf %80, %86 : vector<8x32xf32>
    %c2_89 = arith.constant 2 : index
    %c0_90 = arith.constant 0 : index
    %c0_91 = arith.constant 0 : index
    %88 = vector.load %arg6[%c2_89, %c0_90, %c0_91] : memref<9x8x24xf32, #tpu.memory_space<vmem>>, vector<1x8x24xf32>
    %89 = vector.shape_cast %88 : vector<1x8x24xf32> to vector<8x24xf32>
    %cst_92 = arith.constant dense<0.000000e+00> : vector<8x32xf32>
    %90 = tpu.matmul %89, %74, %cst_92 {dimension_numbers = #tpu.dot_dimension_numbers<[1], [0], [0], [1], [0, 0, 1, 1], [], []>} : vector<8x24xf32>, vector<24x32xf32>, vector<8x32xf32> -> vector<8x32xf32>
    %c2_93 = arith.constant 2 : index
    %c0_94 = arith.constant 0 : index
    %c0_95 = arith.constant 0 : index
    %91 = vector.load %arg7[%c2_93, %c0_94, %c0_95] : memref<9x32x32xf32, #tpu.memory_space<vmem>>, vector<1x32x32xf32>
    %92 = vector.shape_cast %91 : vector<1x32x32xf32> to vector<32x32xf32>
    %cst_96 = arith.constant dense<0.000000e+00> : vector<8x32xf32>
    %93 = tpu.matmul %90, %92, %cst_96 {dimension_numbers = #tpu.dot_dimension_numbers<[1], [0], [0], [1], [0, 0, 1, 1], [], []>} : vector<8x32xf32>, vector<32x32xf32>, vector<8x32xf32> -> vector<8x32xf32>
    %94 = arith.addf %87, %93 : vector<8x32xf32>
    %c3_97 = arith.constant 3 : index
    %c0_98 = arith.constant 0 : index
    %c0_99 = arith.constant 0 : index
    %95 = vector.load %arg6[%c3_97, %c0_98, %c0_99] : memref<9x8x24xf32, #tpu.memory_space<vmem>>, vector<1x8x24xf32>
    %96 = vector.shape_cast %95 : vector<1x8x24xf32> to vector<8x24xf32>
    %cst_100 = arith.constant dense<0.000000e+00> : vector<8x32xf32>
    %97 = tpu.matmul %96, %74, %cst_100 {dimension_numbers = #tpu.dot_dimension_numbers<[1], [0], [0], [1], [0, 0, 1, 1], [], []>} : vector<8x24xf32>, vector<24x32xf32>, vector<8x32xf32> -> vector<8x32xf32>
    %c3_101 = arith.constant 3 : index
    %c0_102 = arith.constant 0 : index
    %c0_103 = arith.constant 0 : index
    %98 = vector.load %arg7[%c3_101, %c0_102, %c0_103] : memref<9x32x32xf32, #tpu.memory_space<vmem>>, vector<1x32x32xf32>
    %99 = vector.shape_cast %98 : vector<1x32x32xf32> to vector<32x32xf32>
    %cst_104 = arith.constant dense<0.000000e+00> : vector<8x32xf32>
    %100 = tpu.matmul %97, %99, %cst_104 {dimension_numbers = #tpu.dot_dimension_numbers<[1], [0], [0], [1], [0, 0, 1, 1], [], []>} : vector<8x32xf32>, vector<32x32xf32>, vector<8x32xf32> -> vector<8x32xf32>
    %101 = arith.addf %94, %100 : vector<8x32xf32>
    %c4_105 = arith.constant 4 : index
    %c0_106 = arith.constant 0 : index
    %c0_107 = arith.constant 0 : index
    %102 = vector.load %arg6[%c4_105, %c0_106, %c0_107] : memref<9x8x24xf32, #tpu.memory_space<vmem>>, vector<1x8x24xf32>
    %103 = vector.shape_cast %102 : vector<1x8x24xf32> to vector<8x24xf32>
    %cst_108 = arith.constant dense<0.000000e+00> : vector<8x32xf32>
    %104 = tpu.matmul %103, %74, %cst_108 {dimension_numbers = #tpu.dot_dimension_numbers<[1], [0], [0], [1], [0, 0, 1, 1], [], []>} : vector<8x24xf32>, vector<24x32xf32>, vector<8x32xf32> -> vector<8x32xf32>
    %c4_109 = arith.constant 4 : index
    %c0_110 = arith.constant 0 : index
    %c0_111 = arith.constant 0 : index
    %105 = vector.load %arg7[%c4_109, %c0_110, %c0_111] : memref<9x32x32xf32, #tpu.memory_space<vmem>>, vector<1x32x32xf32>
    %106 = vector.shape_cast %105 : vector<1x32x32xf32> to vector<32x32xf32>
    %cst_112 = arith.constant dense<0.000000e+00> : vector<8x32xf32>
    %107 = tpu.matmul %104, %106, %cst_112 {dimension_numbers = #tpu.dot_dimension_numbers<[1], [0], [0], [1], [0, 0, 1, 1], [], []>} : vector<8x32xf32>, vector<32x32xf32>, vector<8x32xf32> -> vector<8x32xf32>
    %108 = arith.addf %101, %107 : vector<8x32xf32>
    %c5_113 = arith.constant 5 : index
    %c0_114 = arith.constant 0 : index
    %c0_115 = arith.constant 0 : index
    %109 = vector.load %arg6[%c5_113, %c0_114, %c0_115] : memref<9x8x24xf32, #tpu.memory_space<vmem>>, vector<1x8x24xf32>
    %110 = vector.shape_cast %109 : vector<1x8x24xf32> to vector<8x24xf32>
    %cst_116 = arith.constant dense<0.000000e+00> : vector<8x32xf32>
    %111 = tpu.matmul %110, %74, %cst_116 {dimension_numbers = #tpu.dot_dimension_numbers<[1], [0], [0], [1], [0, 0, 1, 1], [], []>} : vector<8x24xf32>, vector<24x32xf32>, vector<8x32xf32> -> vector<8x32xf32>
    %c5_117 = arith.constant 5 : index
    %c0_118 = arith.constant 0 : index
    %c0_119 = arith.constant 0 : index
    %112 = vector.load %arg7[%c5_117, %c0_118, %c0_119] : memref<9x32x32xf32, #tpu.memory_space<vmem>>, vector<1x32x32xf32>
    %113 = vector.shape_cast %112 : vector<1x32x32xf32> to vector<32x32xf32>
    %cst_120 = arith.constant dense<0.000000e+00> : vector<8x32xf32>
    %114 = tpu.matmul %111, %113, %cst_120 {dimension_numbers = #tpu.dot_dimension_numbers<[1], [0], [0], [1], [0, 0, 1, 1], [], []>} : vector<8x32xf32>, vector<32x32xf32>, vector<8x32xf32> -> vector<8x32xf32>
    %115 = arith.addf %108, %114 : vector<8x32xf32>
    %c6_121 = arith.constant 6 : index
    %c0_122 = arith.constant 0 : index
    %c0_123 = arith.constant 0 : index
    %116 = vector.load %arg6[%c6_121, %c0_122, %c0_123] : memref<9x8x24xf32, #tpu.memory_space<vmem>>, vector<1x8x24xf32>
    %117 = vector.shape_cast %116 : vector<1x8x24xf32> to vector<8x24xf32>
    %cst_124 = arith.constant dense<0.000000e+00> : vector<8x32xf32>
    %118 = tpu.matmul %117, %74, %cst_124 {dimension_numbers = #tpu.dot_dimension_numbers<[1], [0], [0], [1], [0, 0, 1, 1], [], []>} : vector<8x24xf32>, vector<24x32xf32>, vector<8x32xf32> -> vector<8x32xf32>
    %c6_125 = arith.constant 6 : index
    %c0_126 = arith.constant 0 : index
    %c0_127 = arith.constant 0 : index
    %119 = vector.load %arg7[%c6_125, %c0_126, %c0_127] : memref<9x32x32xf32, #tpu.memory_space<vmem>>, vector<1x32x32xf32>
    %120 = vector.shape_cast %119 : vector<1x32x32xf32> to vector<32x32xf32>
    %cst_128 = arith.constant dense<0.000000e+00> : vector<8x32xf32>
    %121 = tpu.matmul %118, %120, %cst_128 {dimension_numbers = #tpu.dot_dimension_numbers<[1], [0], [0], [1], [0, 0, 1, 1], [], []>} : vector<8x32xf32>, vector<32x32xf32>, vector<8x32xf32> -> vector<8x32xf32>
    %122 = arith.addf %115, %121 : vector<8x32xf32>
    %c7_129 = arith.constant 7 : index
    %c0_130 = arith.constant 0 : index
    %c0_131 = arith.constant 0 : index
    %123 = vector.load %arg6[%c7_129, %c0_130, %c0_131] : memref<9x8x24xf32, #tpu.memory_space<vmem>>, vector<1x8x24xf32>
    %124 = vector.shape_cast %123 : vector<1x8x24xf32> to vector<8x24xf32>
    %cst_132 = arith.constant dense<0.000000e+00> : vector<8x32xf32>
    %125 = tpu.matmul %124, %74, %cst_132 {dimension_numbers = #tpu.dot_dimension_numbers<[1], [0], [0], [1], [0, 0, 1, 1], [], []>} : vector<8x24xf32>, vector<24x32xf32>, vector<8x32xf32> -> vector<8x32xf32>
    %c7_133 = arith.constant 7 : index
    %c0_134 = arith.constant 0 : index
    %c0_135 = arith.constant 0 : index
    %126 = vector.load %arg7[%c7_133, %c0_134, %c0_135] : memref<9x32x32xf32, #tpu.memory_space<vmem>>, vector<1x32x32xf32>
    %127 = vector.shape_cast %126 : vector<1x32x32xf32> to vector<32x32xf32>
    %cst_136 = arith.constant dense<0.000000e+00> : vector<8x32xf32>
    %128 = tpu.matmul %125, %127, %cst_136 {dimension_numbers = #tpu.dot_dimension_numbers<[1], [0], [0], [1], [0, 0, 1, 1], [], []>} : vector<8x32xf32>, vector<32x32xf32>, vector<8x32xf32> -> vector<8x32xf32>
    %129 = arith.addf %122, %128 : vector<8x32xf32>
    %c8_137 = arith.constant 8 : index
    %c0_138 = arith.constant 0 : index
    %c0_139 = arith.constant 0 : index
    %130 = vector.load %arg6[%c8_137, %c0_138, %c0_139] : memref<9x8x24xf32, #tpu.memory_space<vmem>>, vector<1x8x24xf32>
    %131 = vector.shape_cast %130 : vector<1x8x24xf32> to vector<8x24xf32>
    %cst_140 = arith.constant dense<0.000000e+00> : vector<8x32xf32>
    %132 = tpu.matmul %131, %74, %cst_140 {dimension_numbers = #tpu.dot_dimension_numbers<[1], [0], [0], [1], [0, 0, 1, 1], [], []>} : vector<8x24xf32>, vector<24x32xf32>, vector<8x32xf32> -> vector<8x32xf32>
    %c8_141 = arith.constant 8 : index
    %c0_142 = arith.constant 0 : index
    %c0_143 = arith.constant 0 : index
    %133 = vector.load %arg7[%c8_141, %c0_142, %c0_143] : memref<9x32x32xf32, #tpu.memory_space<vmem>>, vector<1x32x32xf32>
    %134 = vector.shape_cast %133 : vector<1x32x32xf32> to vector<32x32xf32>
    %cst_144 = arith.constant dense<0.000000e+00> : vector<8x32xf32>
    %135 = tpu.matmul %132, %134, %cst_144 {dimension_numbers = #tpu.dot_dimension_numbers<[1], [0], [0], [1], [0, 0, 1, 1], [], []>} : vector<8x32xf32>, vector<32x32xf32>, vector<8x32xf32> -> vector<8x32xf32>
    %136 = arith.addf %129, %135 : vector<8x32xf32>
    %c0_145 = arith.constant 0 : index
    %c0_146 = arith.constant 0 : index
    %137 = vector.load %arg8[%c0_145, %c0_146] : memref<1x32xf32, #tpu.memory_space<vmem>>, vector<1x32xf32>
    %138 = vector.broadcast %137 : vector<1x32xf32> to vector<8x32xf32>
    %139 = arith.addf %136, %138 : vector<8x32xf32>
    %c0_147 = arith.constant 0 : index
    %c0_148 = arith.constant 0 : index
    %140 = vector.load %arg9[%c0_147, %c0_148] : memref<32x128xf32, #tpu.memory_space<vmem>>, vector<32x128xf32>
    %cst_149 = arith.constant dense<0.000000e+00> : vector<8x128xf32>
    %141 = tpu.matmul %139, %140, %cst_149 {dimension_numbers = #tpu.dot_dimension_numbers<[1], [0], [0], [1], [0, 0, 1, 1], [], []>} : vector<8x32xf32>, vector<32x128xf32>, vector<8x128xf32> -> vector<8x128xf32>
    %c0_150 = arith.constant 0 : index
    %c0_151 = arith.constant 0 : index
    %142 = vector.load %arg10[%c0_150, %c0_151] : memref<1x128xf32, #tpu.memory_space<vmem>>, vector<1x128xf32>
    %143 = vector.broadcast %142 : vector<1x128xf32> to vector<8x128xf32>
    %144 = arith.addf %141, %143 : vector<8x128xf32>
    %cst_152 = arith.constant 0.000000e+00 : f32
    %145 = vector.broadcast %cst_152 : f32 to vector<8x128xf32>
    %146 = arith.maximumf %144, %145 : vector<8x128xf32>
    %c0_153 = arith.constant 0 : index
    %c0_154 = arith.constant 0 : index
    %147 = vector.load %arg11[%c0_153, %c0_154] : memref<128x128xf32, #tpu.memory_space<vmem>>, vector<128x128xf32>
    %cst_155 = arith.constant dense<0.000000e+00> : vector<8x128xf32>
    %148 = tpu.matmul %146, %147, %cst_155 {dimension_numbers = #tpu.dot_dimension_numbers<[1], [0], [0], [1], [0, 0, 1, 1], [], []>} : vector<8x128xf32>, vector<128x128xf32>, vector<8x128xf32> -> vector<8x128xf32>
    %c0_156 = arith.constant 0 : index
    %c0_157 = arith.constant 0 : index
    %149 = vector.load %arg12[%c0_156, %c0_157] : memref<1x128xf32, #tpu.memory_space<vmem>>, vector<1x128xf32>
    %150 = vector.broadcast %149 : vector<1x128xf32> to vector<8x128xf32>
    %151 = arith.addf %148, %150 : vector<8x128xf32>
    %cst_158 = arith.constant 0.000000e+00 : f32
    %152 = vector.broadcast %cst_158 : f32 to vector<8x128xf32>
    %153 = arith.maximumf %151, %152 : vector<8x128xf32>
    %c0_159 = arith.constant 0 : index
    %c0_160 = arith.constant 0 : index
    %154 = vector.load %arg13[%c0_159, %c0_160] : memref<128x128xf32, #tpu.memory_space<vmem>>, vector<128x128xf32>
    %cst_161 = arith.constant dense<0.000000e+00> : vector<8x128xf32>
    %155 = tpu.matmul %153, %154, %cst_161 {dimension_numbers = #tpu.dot_dimension_numbers<[1], [0], [0], [1], [0, 0, 1, 1], [], []>} : vector<8x128xf32>, vector<128x128xf32>, vector<8x128xf32> -> vector<8x128xf32>
    %c0_162 = arith.constant 0 : index
    %c0_163 = arith.constant 0 : index
    %156 = vector.load %arg14[%c0_162, %c0_163] : memref<1x128xf32, #tpu.memory_space<vmem>>, vector<1x128xf32>
    %157 = vector.broadcast %156 : vector<1x128xf32> to vector<8x128xf32>
    %158 = arith.addf %155, %157 : vector<8x128xf32>
    %c0_164 = arith.constant 0 : index
    %c0_165 = arith.constant 0 : index
    %159 = vector.load %arg15[%c0_164, %c0_165] : memref<8x128xf32, #tpu.memory_space<vmem>>, vector<8x128xf32>
    tpu.vector_store %arg15[%c0_164, %c0_165], %158 {strides = array<i32>} : memref<8x128xf32, #tpu.memory_space<vmem>>, vector<8x128xf32>,
    return
  }
}

</mosaic_0001>

<bundles_post_ra>
// kernel: behavioral_cloning_forward.1
= control target key start
LH: loop header
LB: loop body
LE: loop exit
PB: predicated region body
PF: predicated region fallthrough
CT: control target
= control target key end

     0   :  { %v4951_v0 = vmov 0.0   ;;  %vm4952_vm0 = vmmov 0   ;;  %vm74_vm1 = vcmask 261120   ;;  %vm260_vm2 = vcmask 850944   ;;  %s6288_s1 = inlined_call_operand.vmem [shape: f32[32,32], index: 1, kind: input, shape index: {}]   ;;  %s6289_s0 = inlined_call_operand.vmem [shape: f32[104,32], index: 0, kind: input, shape index: {}]   ;;  %s6290_s4 = inlined_call_operand.vmem [shape: f32[9,32,32], index: 4, kind: input, shape index: {}]   ;;  %s6291_s2 = inlined_call_operand.vmem [shape: f32[1,32], index: 2, kind: input, shape index: {}]   ;;  %s6292_s3 = inlined_call_operand.vmem [shape: f32[9,24,104], index: 3, kind: input, shape index: {}]   ;;  %s6293_s7 = inlined_call_operand.vmem [shape: f32[9,32,32], index: 7, kind: input, shape index: {}]   ;;  %s6294_s5 = inlined_call_operand.vmem [shape: f32[1,32], index: 5, kind: input, shape index: {}]   ;;  %s6295_s6 = inlined_call_operand.vmem [shape: f32[9,8,24], index: 6, kind: input, shape index: {}]   ;;  %s6296_s9 = inlined_call_operand.vmem [shape: f32[32,128], index: 9, kind: input, shape index: {}]   ;;  %s6297_s11 = inlined_call_operand.vmem [shape: f32[128,128], index: 11, kind: input, shape index: {}]   ;;  %s6298_s8 = inlined_call_operand.vmem [shape: f32[1,32], index: 8, kind: input, shape index: {}]   ;;  %s6299_s13 = inlined_call_operand.vmem [shape: f32[128,128], index: 13, kind: input, shape index: {}]   ;;  %s6300_s10 = inlined_call_operand.vmem [shape: f32[1,128], index: 10, kind: input, shape index: {}]   ;;  %s6301_s12 = inlined_call_operand.vmem [shape: f32[1,128], index: 12, kind: input, shape index: {}]   ;;  %s6302_s14 = inlined_call_operand.vmem [shape: f32[1,128], index: 14, kind: input, shape index: {}]   ;;  %s6303_s15 = inlined_call_operand.vmem [shape: f32[8,128], index: 15, kind: output, shape index: {}]  }
   0x1   :  { %4173 = vmatprep.subr.mxu0 %v4951_v0  ;;  %v66_v1 = vld [vmem:[%s6288_s1 + $0x18] sm:$0xff]  ;;  %v65_v2 = vld [vmem:[%s6288_s1 + $0x10] sm:$0xff]  ;;  %4181 = vmatprep.mubr.msk.f32.mxu0 %vm4952_vm0, %v4951_v0  ;;  %v64_v3 = vld [vmem:[%s6288_s1 + $0x8] sm:$0xff]  ;;  %vm1974_vm3 = vcmask 195584  }
   0x2   :  { %4174 = vmatpush3.msra.mxu0 %v66_v1  ;;  %4220 = vmatprep.subr.mxu1 %v4951_v0  ;;  %v63_v4 = vld [vmem:[%s6288_s1] sm:$0xff]  ;;  %v51_v6 = vld [vmem:[%s6289_s0 + $0x8] sm:$0xff]  ;;  %v52_v7 = vld [vmem:[%s6289_s0 + $0x10] sm:$0xff] }
   0x3   :  { %4175 = vmatprep.subr.mxu0 %v4951_v0  ;;  %4246 = vmatprep.mubr.msk.f32.mxu1 %vm4952_vm0, %v4951_v0  ;;  %v50_v5 = vld [vmem:[%s6289_s0] sm:$0xff]  ;;  %v53_v8 = vld [vmem:[%s6289_s0 + $0x18] sm:$0xff]  ;;  %v55_v10 = vld [vmem:[%s6289_s0 + $0x28] sm:$0xff] }
   0x4   :  { %4176 = vmatpush3.msra.mxu0 %v65_v2  ;;  %v54_v9 = vld [vmem:[%s6289_s0 + $0x20] sm:$0xff]  ;;  %v56_v11 = vld [vmem:[%s6289_s0 + $0x30] sm:$0xff]  ;;  %v57_v12 = vld [vmem:[%s6289_s0 + $0x38] sm:$0xff] }
   0x5   :  { %4177 = vmatprep.subr.mxu0 %v4951_v0  ;;  %v58_v13 = vld [vmem:[%s6289_s0 + $0x40] sm:$0xff]  ;;  %v59_v14 = vld [vmem:[%s6289_s0 + $0x48] sm:$0xff]  ;;  %v60_v15 = vld [vmem:[%s6289_s0 + $0x50] sm:$0xff] }
   0x6   :  { %4178 = vmatpush3.msra.mxu0 %v64_v3  ;;  %v61_v16 = vld [vmem:[%s6289_s0 + $0x58] sm:$0xff]  ;;  %v62_v17 = vld [vmem:[%s6289_s0 + $0x60] sm:$0xff]  ;;  %v3666_v19 = vld [vmem:[%s6290_s4 + $0x30] sm:$0xff] }
   0x7   :  { %4179 = vmatprep.subr.mxu0 %v4951_v0  ;;  %v3667_v18 = vld [vmem:[%s6290_s4 + $0x38] sm:$0xff]  ;;  %v3641_v44 = vld [vmem:[%s6291_s2] ss:$0 sm:$0xff] }
   0x8   :  { %4180 = vmatpush3.msra.mxu0 %v63_v4 }
   0x9   :  { %4182 = vmatmul.mubr.msk.f32.vlgmr.msra.gmra.mxu0 %vm74_vm1, %v50_v5  ;;  %4290 = vmatprep.subr.mxu0 %v4951_v0 }
   0xa   :  { %4184 = vmatprep.mubr.msk.f32.mxu0 %vm4952_vm0, %v4951_v0  ;;  %4291 = vmatpush3.msra.mxu0 %v3667_v18  ;;  %v3660_v18 = vld [vmem:[%s6292_s3 + $0x28] sm:$0xff] }
   0xb   :  { %4292 = vmatprep.subr.mxu0 %v4951_v0 }
   0xc   :  { %4293 = vmatpush3.msra.mxu0 %v3666_v19  ;;  %v350_v19 = vld [vmem:[%s6290_s4] sm:$0xff] }
   0xd   :  { %4185 = vmatmul.mubr.msk.f32.gmra.mxu0 %vm74_vm1, %v51_v6  ;;  %4294 = vmatprep.subr.mxu0 %v4951_v0 }
   0xe   :  { %4187 = vmatprep.mubr.msk.f32.mxu0 %vm4952_vm0, %v4951_v0 }
  0x11   :  { %4188 = vmatmul.mubr.msk.f32.gmra.mxu0 %vm74_vm1, %v52_v7 }
  0x12   :  { %4190 = vmatprep.mubr.msk.f32.mxu0 %vm4952_vm0, %v4951_v0 }
  0x15   :  { %4191 = vmatmul.mubr.msk.f32.gmra.mxu0 %vm74_vm1, %v53_v8 }
  0x16   :  { %4193 = vmatprep.mubr.msk.f32.mxu0 %vm4952_vm0, %v4951_v0 }
  0x19   :  { %4194 = vmatmul.mubr.msk.f32.gmra.mxu0 %vm74_vm1, %v54_v9 }
  0x1a   :  { %4196 = vmatprep.mubr.msk.f32.mxu0 %vm4952_vm0, %v4951_v0 }
  0x1d   :  { %4197 = vmatmul.mubr.msk.f32.gmra.mxu0 %vm74_vm1, %v55_v10  ;;  %v257_v10 = vld [vmem:[%s6292_s3] sm:$0xff] }
  0x1e   :  { %4199 = vmatprep.mubr.msk.f32.mxu0 %vm4952_vm0, %v4951_v0 }
  0x21   :  { %4200 = vmatmul.mubr.msk.f32.gmra.mxu0 %vm74_vm1, %v56_v11  ;;  %v258_v11 = vld [vmem:[%s6292_s3 + $0x8] sm:$0xff] }
  0x22   :  { %4202 = vmatprep.mubr.msk.f32.mxu0 %vm4952_vm0, %v4951_v0 }
  0x25   :  { %4203 = vmatmul.mubr.msk.f32.gmra.mxu0 %vm74_vm1, %v57_v12  ;;  %v259_v12 = vld [vmem:[%s6292_s3 + $0x10] sm:$0xff] }
  0x26   :  { %4205 = vmatprep.mubr.msk.f32.mxu0 %vm4952_vm0, %v4951_v0 }
  0x29   :  { %4206 = vmatmul.mubr.msk.f32.gmra.mxu0 %vm74_vm1, %v58_v13  ;;  %v3658_v13 = vld [vmem:[%s6292_s3 + $0x18] sm:$0xff] }
  0x2a   :  { %4208 = vmatprep.mubr.msk.f32.mxu0 %vm4952_vm0, %v4951_v0 }
  0x2d   :  { %4209 = vmatmul.mubr.msk.f32.gmra.mxu0 %vm74_vm1, %v59_v14  ;;  %v353_v14 = vld [vmem:[%s6290_s4 + $0x18] sm:$0xff] }
  0x2e   :  { %4211 = vmatprep.mubr.msk.f32.mxu0 %vm4952_vm0, %v4951_v0 }
  0x31   :  { %4212 = vmatmul.mubr.msk.f32.gmra.mxu0 %vm74_vm1, %v60_v15  ;;  %v352_v15 = vld [vmem:[%s6290_s4 + $0x10] sm:$0xff] }
  0x32   :  { %4214 = vmatprep.mubr.msk.f32.mxu0 %vm4952_vm0, %v4951_v0 }
  0x35   :  { %4215 = vmatmul.mubr.msk.f32.gmra.mxu0 %vm74_vm1, %v61_v16  ;;  %v3659_v16 = vld [vmem:[%s6292_s3 + $0x20] sm:$0xff] }
  0x36   :  { %4217 = vmatprep.mubr.msk.f32.mxu0 %vm4952_vm0, %v4951_v0 }
  0x39   :  { %4218 = vmatmul.mubr.msk.f32.gmra.mxu0 %vm74_vm1, %v62_v17  ;;  %v351_v17 = vld [vmem:[%s6290_s4 + $0x8] sm:$0xff] }
  0x3a   :  { %4298 = vmatprep.mubr.msk.f32.mxu0 %vm4952_vm0, %v4951_v0 }
  0xc9   :  { %v5141_v20 = vpop.f32.mrf.mxu0 }
  0xca   :  { %v181_v6 = vadd.f32 %v3641_v44, %v5141_v20  ;;  %v3665_v20 = vld [vmem:[%s6290_s4 + $0x28] sm:$0xff] }
  0xcb   :  { %v4183_v21 = vpop.f32.mrf.mxu0  ;;  %4295 = vmatpush3.msra.mxu0 %v3665_v20 }
  0xcc   :  { %v5193_v9 = vmax.f32 %v181_v6, 0.0  ;;  %4296 = vmatprep.subr.mxu0 %v4951_v0  ;;  %v3664_v21 = vld [vmem:[%s6290_s4 + $0x20] sm:$0xff] }
  0xcd   :  { %v185_v22 = vpop.f32.mrf.mxu0  ;;  %4297 = vmatpush3.msra.mxu0 %v3664_v21 }
  0xce   :  { %v186_v4 = vadd.f32 %v3641_v44, %v185_v22  ;;  %4324 = vmatprep.subr.mxu0 %v4951_v0 }
  0xcf   :  { %v4186_v23 = vpop.f32.mrf.mxu0 }
  0xd0   :  { %v5189_v8 = vmax.f32 %v186_v4, 0.0 }
  0xd1   :  { %v190_v24 = vpop.f32.mrf.mxu0 }
  0xd2   :  { %v191_v2 = vadd.f32 %v3641_v44, %v190_v24 }
  0xd3   :  { %v4189_v25 = vpop.f32.mrf.mxu0 }
  0xd4   :  { %v5185_v7 = vmax.f32 %v191_v2, 0.0 }
  0xd5   :  { %v195_v26 = vpop.f32.mrf.mxu0 }
  0xd6   :  { %v196_v63 = vadd.f32 %v3641_v44, %v195_v26 }
  0xd7   :  { %v4192_v27 = vpop.f32.mrf.mxu0 }
  0xd8   :  { %v5180_v5 = vmax.f32 %v196_v63, 0.0 }
  0xd9   :  { %v200_v28 = vpop.f32.mrf.mxu0 }
  0xda   :  { %v201_v61 = vadd.f32 %v3641_v44, %v200_v28 }
  0xdb   :  { %v4195_v29 = vpop.f32.mrf.mxu0 }
  0xdc   :  { %v5176_v3 = vmax.f32 %v201_v61, 0.0 }
  0xdd   :  { %v205_v30 = vpop.f32.mrf.mxu0 }
  0xde   :  { %v206_v59 = vadd.f32 %v3641_v44, %v205_v30 }
  0xdf   :  { %v4198_v31 = vpop.f32.mrf.mxu0 }
  0xe0   :  { %v5172_v1 = vmax.f32 %v206_v59, 0.0 }
  0xe1   :  { %v210_v32 = vpop.f32.mrf.mxu0 }
  0xe2   :  { %v211_v57 = vadd.f32 %v3641_v44, %v210_v32 }
  0xe3   :  { %v4201_v33 = vpop.f32.mrf.mxu0 }
  0xe4   :  { %v5168_v62 = vmax.f32 %v211_v57, 0.0 }
  0xe5   :  { %v215_v34 = vpop.f32.mrf.mxu0 }
  0xe6   :  { %v216_v55 = vadd.f32 %v3641_v44, %v215_v34  ;;  %v3674_v34 = vld [vmem:[%s6292_s3 + $0x30] sm:$0xff] }
  0xe7   :  { %v4204_v35 = vpop.f32.mrf.mxu0 }
  0xe8   :  { %v5164_v60 = vmax.f32 %v216_v55, 0.0  ;;  %v3675_v35 = vld [vmem:[%s6292_s3 + $0x38] sm:$0xff] }
  0xe9   :  { %v220_v36 = vpop.f32.mrf.mxu0 }
  0xea   :  { %v221_v53 = vadd.f32 %v3641_v44, %v220_v36  ;;  %v3676_v36 = vld [vmem:[%s6292_s3 + $0x40] sm:$0xff] }
  0xeb   :  { %v4207_v37 = vpop.f32.mrf.mxu0 }
  0xec   :  { %v5160_v58 = vmax.f32 %v221_v53, 0.0  ;;  %v3683_v37 = vld [vmem:[%s6290_s4 + $0x58] sm:$0xff] }
  0xed   :  { %v225_v38 = vpop.f32.mrf.mxu0 }
  0xee   :  { %v226_v51 = vadd.f32 %v3641_v44, %v225_v38  ;;  %v3682_v38 = vld [vmem:[%s6290_s4 + $0x50] sm:$0xff] }
  0xef   :  { %v4210_v39 = vpop.f32.mrf.mxu0 }
  0xf0   :  { %v5156_v56 = vmax.f32 %v226_v51, 0.0  ;;  %v3681_v39 = vld [vmem:[%s6290_s4 + $0x48] sm:$0xff] }
  0xf1   :  { %v230_v40 = vpop.f32.mrf.mxu0 }
  0xf2   :  { %v231_v49 = vadd.f32 %v3641_v44, %v230_v40  ;;  %v3680_v40 = vld [vmem:[%s6290_s4 + $0x40] sm:$0xff] }
  0xf3   :  { %v4213_v41 = vpop.f32.mrf.mxu0 }
  0xf4   :  { %v5152_v54 = vmax.f32 %v231_v49, 0.0 }
  0xf5   :  { %v235_v42 = vpop.f32.mrf.mxu0 }
  0xf6   :  { %v236_v46 = vadd.f32 %v3641_v44, %v235_v42 }
  0xf7   :  { %v4216_v43 = vpop.f32.mrf.mxu0 }
  0xf8   :  { %v5148_v52 = vmax.f32 %v236_v46, 0.0 }
  0xf9   :  { %v240_v45 = vpop.f32.mrf.mxu0 }
  0xfa   :  { %v241_v47 = vadd.f32 %v3641_v44, %v240_v45 }
  0xfb   :  { %v4219_v48 = vpop.f32.mrf.mxu0 }
  0xfc   :  { %v5146_v50 = vmax.f32 %v241_v47, 0.0 }
  0xfe   :  { %4221 = vmatpush3.msra.mxu1 %v5146_v50 }
  0xff   :  { %4222 = vmatprep.subr.mxu1 %v4951_v0 }
 0x100   :  { %4223 = vmatpush3.msra.mxu1 %v5148_v52 }
 0x101   :  { %4224 = vmatprep.subr.mxu1 %v4951_v0 }
 0x102   :  { %4225 = vmatpush3.msra.mxu1 %v5152_v54 }
 0x103   :  { %4226 = vmatprep.subr.mxu1 %v4951_v0 }
 0x104   :  { %4227 = vmatpush3.msra.mxu1 %v5156_v56 }
 0x105   :  { %4228 = vmatprep.subr.mxu1 %v4951_v0 }
 0x106   :  { %4229 = vmatpush3.msra.mxu1 %v5160_v58 }
 0x107   :  { %4230 = vmatprep.subr.mxu1 %v4951_v0 }
 0x108   :  { %4231 = vmatpush3.msra.mxu1 %v5164_v60 }
 0x109   :  { %4232 = vmatprep.subr.mxu1 %v4951_v0 }
 0x10a   :  { %4233 = vmatpush3.msra.mxu1 %v5168_v62 }
 0x10b   :  { %4234 = vmatprep.subr.mxu1 %v4951_v0 }
 0x10c   :  { %4235 = vmatpush3.msra.mxu1 %v5172_v1 }
 0x10d   :  { %4236 = vmatprep.subr.mxu1 %v4951_v0 }
 0x10e   :  { %4237 = vmatpush3.msra.mxu1 %v5176_v3 }
 0x10f   :  { %4238 = vmatprep.subr.mxu1 %v4951_v0 }
 0x110   :  { %4239 = vmatpush3.msra.mxu1 %v5180_v5 }
 0x111   :  { %4240 = vmatprep.subr.mxu1 %v4951_v0 }
 0x112   :  { %4241 = vmatpush3.msra.mxu1 %v5185_v7 }
 0x113   :  { %4242 = vmatprep.subr.mxu1 %v4951_v0 }
 0x114   :  { %4243 = vmatpush3.msra.mxu1 %v5189_v8 }
 0x115   :  { %4244 = vmatprep.subr.mxu1 %v4951_v0 }
 0x116   :  { %4245 = vmatpush3.msra.mxu1 %v5193_v9 }
 0x117   :  { %4247 = vmatmul.mubr.msk.f32.vlgmr.msra.gmra.mxu1 %vm260_vm2, %v257_v10  ;;  %4255 = vmatprep.subr.mxu1 %v4951_v0 }
 0x118   :  { %4256 = vmatpush3.msra.mxu1 %v5146_v50  ;;  %4249 = vmatprep.mubr.msk.f32.mxu1 %vm4952_vm0, %v4951_v0 }
 0x119   :  { %4257 = vmatprep.subr.mxu1 %v4951_v0 }
 0x11a   :  { %4258 = vmatpush3.msra.mxu1 %v5148_v52 }
 0x11b   :  { %4259 = vmatprep.subr.mxu1 %v4951_v0  ;;  %4250 = vmatmul.mubr.msk.f32.gmra.mxu1 %vm260_vm2, %v258_v11 }
 0x11c   :  { %4260 = vmatpush3.msra.mxu1 %v5152_v54  ;;  %4252 = vmatprep.mubr.msk.f32.mxu1 %vm4952_vm0, %v4951_v0 }
 0x11d   :  { %4261 = vmatprep.subr.mxu1 %v4951_v0 }
 0x11e   :  { %4262 = vmatpush3.msra.mxu1 %v5156_v56 }
 0x11f   :  { %4263 = vmatprep.subr.mxu1 %v4951_v0  ;;  %4253 = vmatmul.mubr.msk.f32.gmra.mxu1 %vm260_vm2, %v259_v12  ;;  %v3687_v12 = vld [vmem:[%s6292_s3 + $0x48] sm:$0xff] }
 0x120   :  { %4264 = vmatpush3.msra.mxu1 %v5160_v58  ;;  %4281 = vmatprep.mubr.msk.f32.mxu1 %vm4952_vm0, %v4951_v0 }
 0x121   :  { %4265 = vmatprep.subr.mxu1 %v4951_v0 }
 0x122   :  { %4266 = vmatpush3.msra.mxu1 %v5164_v60 }
 0x123   :  { %4267 = vmatprep.subr.mxu1 %v4951_v0 }
 0x124   :  { %4268 = vmatpush3.msra.mxu1 %v5168_v62 }
 0x125   :  { %4269 = vmatprep.subr.mxu1 %v4951_v0 }
 0x126   :  { %4270 = vmatpush3.msra.mxu1 %v5172_v1 }
 0x127   :  { %4271 = vmatprep.subr.mxu1 %v4951_v0 }
 0x128   :  { %4272 = vmatpush3.msra.mxu1 %v5176_v3 }
 0x129   :  { %4273 = vmatprep.subr.mxu1 %v4951_v0 }
 0x12a   :  { %4274 = vmatpush3.msra.mxu1 %v5180_v5 }
 0x12b   :  { %4275 = vmatprep.subr.mxu1 %v4951_v0 }
 0x12c   :  { %4276 = vmatpush3.msra.mxu1 %v5185_v7 }
 0x12d   :  { %4277 = vmatprep.subr.mxu1 %v4951_v0 }
 0x12e   :  { %4278 = vmatpush3.msra.mxu1 %v5189_v8 }
 0x12f   :  { %4279 = vmatprep.subr.mxu1 %v4951_v0 }
 0x130   :  { %4280 = vmatpush3.msra.mxu1 %v5193_v9 }
 0x131   :  { %4282 = vmatmul.mubr.msk.f32.vlgmr.msra.gmra.mxu1 %vm260_vm2, %v3658_v13  ;;  %4307 = vmatprep.subr.mxu1 %v4951_v0  ;;  %v3688_v13 = vld [vmem:[%s6292_s3 + $0x50] sm:$0xff] }
 0x132   :  { %4284 = vmatprep.mubr.msk.f32.mxu1 %vm4952_vm0, %v4951_v0  ;;  %4308 = vmatpush3.msra.mxu1 %v353_v14  ;;  %v3689_v14 = vld [vmem:[%s6292_s3 + $0x58] sm:$0xff] }
 0x133   :  { %4309 = vmatprep.subr.mxu1 %v4951_v0 }
 0x134   :  { %4310 = vmatpush3.msra.mxu1 %v352_v15  ;;  %v3696_v15 = vld [vmem:[%s6290_s4 + $0x78] sm:$0xff] }
 0x135   :  { %4285 = vmatmul.mubr.msk.f32.gmra.mxu1 %vm260_vm2, %v3659_v16  ;;  %4311 = vmatprep.subr.mxu1 %v4951_v0  ;;  %v3695_v16 = vld [vmem:[%s6290_s4 + $0x70] sm:$0xff] }
 0x136   :  { %4287 = vmatprep.mubr.msk.f32.mxu1 %vm4952_vm0, %v4951_v0  ;;  %4312 = vmatpush3.msra.mxu1 %v351_v17  ;;  %v3694_v17 = vld [vmem:[%s6290_s4 + $0x68] sm:$0xff] }
 0x137   :  { %4313 = vmatprep.subr.mxu1 %v4951_v0 }
 0x138   :  { %4314 = vmatpush3.msra.mxu1 %v350_v19 }
 0x139   :  { %4288 = vmatmul.mubr.msk.f32.gmra.mxu1 %vm260_vm2, %v3660_v18  ;;  %4359 = vmatprep.subr.mxu1 %v4951_v0  ;;  %v3693_v18 = vld [vmem:[%s6290_s4 + $0x60] sm:$0xff] }
 0x13a   :  { %4315 = vmatprep.mubr.msk.f32.mxu1 %vm4952_vm0, %v4951_v0 }
 0x1d7   :  { %v336_v22 = vpop.f32.mrf.mxu1 }
 0x1d8   :  { %4316 = vmatmul.mubr.msk.f32.vlgmr.msra.gmra.mxu1 %vm74_vm1, %v336_v22 }
 0x1d9   :  { %v4248_v23 = vpop.f32.mrf.mxu1  ;;  %4318 = vmatprep.mubr.msk.f32.mxu1 %vm4952_vm0, %v4951_v0  ;;  %4360 = vmatpush3.msra.mxu1 %v3683_v37  ;;  %v3709_v37 = vld [vmem:[%s6290_s4 + $0x98] sm:$0xff] }
 0x1da   :  { %4361 = vmatprep.subr.mxu1 %v4951_v0 }
 0x1db   :  { %v341_v24 = vpop.f32.mrf.mxu1  ;;  %4362 = vmatpush3.msra.mxu1 %v3682_v38  ;;  %v3708_v38 = vld [vmem:[%s6290_s4 + $0x90] sm:$0xff] }
 0x1dc   :  { %4319 = vmatmul.mubr.msk.f32.gmra.mxu1 %vm74_vm1, %v341_v24  ;;  %4363 = vmatprep.subr.mxu1 %v4951_v0 }
 0x1dd   :  { %v4251_v25 = vpop.f32.mrf.mxu1  ;;  %4321 = vmatprep.mubr.msk.f32.mxu1 %vm4952_vm0, %v4951_v0  ;;  %4364 = vmatpush3.msra.mxu1 %v3681_v39  ;;  %v3707_v39 = vld [vmem:[%s6290_s4 + $0x88] sm:$0xff] }
 0x1de   :  { %4365 = vmatprep.subr.mxu1 %v4951_v0 }
 0x1df   :  { %v346_v26 = vpop.f32.mrf.mxu1  ;;  %4366 = vmatpush3.msra.mxu1 %v3680_v40  ;;  %v3706_v40 = vld [vmem:[%s6290_s4 + $0x80] sm:$0xff] }
 0x1e0   :  { %4322 = vmatmul.mubr.msk.f32.gmra.mxu1 %vm74_vm1, %v346_v26  ;;  %4376 = vmatprep.subr.mxu1 %v4951_v0 }
 0x1e1   :  { %v4254_v27 = vpop.f32.mrf.mxu1  ;;  %4367 = vmatprep.mubr.msk.f32.mxu1 %vm4952_vm0, %v4951_v0 }
 0x1f1   :  { %v433_v28 = vpop.f32.mrf.mxu1 }
 0x1f2   :  { %4299 = vmatmul.mubr.msk.f32.vlgmr.msra.gmra.mxu0 %vm74_vm1, %v433_v28 }
 0x1f3   :  { %4325 = vmatpush3.msra.mxu0 %v5146_v50  ;;  %v4283_v29 = vpop.f32.mrf.mxu1  ;;  %4301 = vmatprep.mubr.msk.f32.mxu0 %vm4952_vm0, %v4951_v0 }
 0x1f4   :  { %4326 = vmatprep.subr.mxu0 %v4951_v0 }
 0x1f5   :  { %4327 = vmatpush3.msra.mxu0 %v5148_v52  ;;  %v438_v30 = vpop.f32.mrf.mxu1 }
 0x1f6   :  { %4328 = vmatprep.subr.mxu0 %v4951_v0  ;;  %4302 = vmatmul.mubr.msk.f32.gmra.mxu0 %vm74_vm1, %v438_v30 }
 0x1f7   :  { %4329 = vmatpush3.msra.mxu0 %v5152_v54  ;;  %v4286_v31 = vpop.f32.mrf.mxu1  ;;  %4304 = vmatprep.mubr.msk.f32.mxu0 %vm4952_vm0, %v4951_v0 }
 0x1f8   :  { %4330 = vmatprep.subr.mxu0 %v4951_v0 }
 0x1f9   :  { %4331 = vmatpush3.msra.mxu0 %v5156_v56  ;;  %v443_v32 = vpop.f32.mrf.mxu1 }
 0x1fa   :  { %4332 = vmatprep.subr.mxu0 %v4951_v0  ;;  %4305 = vmatmul.mubr.msk.f32.gmra.mxu0 %vm74_vm1, %v443_v32 }
 0x1fb   :  { %4333 = vmatpush3.msra.mxu0 %v5160_v58  ;;  %v4289_v33 = vpop.f32.mrf.mxu1  ;;  %4350 = vmatprep.mubr.msk.f32.mxu0 %vm4952_vm0, %v4951_v0 }
 0x1fc   :  { %4334 = vmatprep.subr.mxu0 %v4951_v0 }
 0x1fd   :  { %4335 = vmatpush3.msra.mxu0 %v5164_v60 }
 0x1fe   :  { %4336 = vmatprep.subr.mxu0 %v4951_v0 }
 0x1ff   :  { %4337 = vmatpush3.msra.mxu0 %v5168_v62 }
 0x200   :  { %4338 = vmatprep.subr.mxu0 %v4951_v0 }
 0x201   :  { %4339 = vmatpush3.msra.mxu0 %v5172_v1 }
 0x202   :  { %4340 = vmatprep.subr.mxu0 %v4951_v0 }
 0x203   :  { %4341 = vmatpush3.msra.mxu0 %v5176_v3 }
 0x204   :  { %4342 = vmatprep.subr.mxu0 %v4951_v0 }
 0x205   :  { %4343 = vmatpush3.msra.mxu0 %v5180_v5 }
 0x206   :  { %4344 = vmatprep.subr.mxu0 %v4951_v0 }
 0x207   :  { %4345 = vmatpush3.msra.mxu0 %v5185_v7 }
 0x208   :  { %4346 = vmatprep.subr.mxu0 %v4951_v0 }
 0x209   :  { %4347 = vmatpush3.msra.mxu0 %v5189_v8 }
 0x20a   :  { %4348 = vmatprep.subr.mxu0 %v4951_v0 }
 0x20b   :  { %4349 = vmatpush3.msra.mxu0 %v5193_v9 }
 0x20c   :  { %4351 = vmatmul.mubr.msk.f32.vlgmr.msra.gmra.mxu0 %vm260_vm2, %v3674_v34  ;;  %4411 = vmatprep.subr.mxu0 %v4951_v0  ;;  %v3700_v34 = vld [vmem:[%s6292_s3 + $0x60] sm:$0xff] }
 0x20d   :  { %4353 = vmatprep.mubr.msk.f32.mxu0 %vm4952_vm0, %v4951_v0  ;;  %4412 = vmatpush3.msra.mxu0 %v3696_v15 }
 0x20e   :  { %4413 = vmatprep.subr.mxu0 %v4951_v0 }
 0x20f   :  { %4414 = vmatpush3.msra.mxu0 %v3695_v16 }
 0x210   :  { %4354 = vmatmul.mubr.msk.f32.gmra.mxu0 %vm260_vm2, %v3675_v35  ;;  %4415 = vmatprep.subr.mxu0 %v4951_v0  ;;  %v3701_v35 = vld [vmem:[%s6292_s3 + $0x68] sm:$0xff] }
 0x211   :  { %4356 = vmatprep.mubr.msk.f32.mxu0 %vm4952_vm0, %v4951_v0  ;;  %4416 = vmatpush3.msra.mxu0 %v3694_v17 }
 0x212   :  { %4417 = vmatprep.subr.mxu0 %v4951_v0 }
 0x213   :  { %4418 = vmatpush3.msra.mxu0 %v3693_v18 }
 0x214   :  { %4357 = vmatmul.mubr.msk.f32.gmra.mxu0 %vm260_vm2, %v3676_v36  ;;  %4428 = vmatprep.subr.mxu0 %v4951_v0  ;;  %v3702_v36 = vld [vmem:[%s6292_s3 + $0x70] sm:$0xff] }
 0x215   :  { %4419 = vmatprep.mubr.msk.f32.mxu0 %vm4952_vm0, %v4951_v0 }
 0x298   :  { %v616_v41 = vpop.f32.mrf.mxu1 }
 0x29a   :  { %v4317_v42 = vpop.f32.mrf.mxu1 }
 0x29c   :  { %v621_v43 = vpop.f32.mrf.mxu1 }
 0x29e   :  { %v4320_v44 = vpop.f32.mrf.mxu1 }
 0x2a0   :  { %v626_v45 = vpop.f32.mrf.mxu1 }
 0x2a2   :  { %v4323_v46 = vpop.f32.mrf.mxu1 }
 0x2b2   :  { %v527_v47 = vpop.f32.mrf.mxu0 }
 0x2b3   :  { %v5363_v48 = vadd.f32 %v616_v41, %v527_v47 }
 0x2b4   :  { %v4300_v49 = vpop.f32.mrf.mxu0 }
 0x2b6   :  { %v532_v51 = vpop.f32.mrf.mxu0 }
 0x2b7   :  { %v5365_v53 = vadd.f32 %v621_v43, %v532_v51 }
 0x2b8   :  { %v4303_v55 = vpop.f32.mrf.mxu0 }
 0x2ba   :  { %v537_v57 = vpop.f32.mrf.mxu0 }
 0x2bb   :  { %v5367_v59 = vadd.f32 %v626_v45, %v537_v57 }
 0x2bc   :  { %v4306_v61 = vpop.f32.mrf.mxu0 }
 0x2cc   :  { %v709_v63 = vpop.f32.mrf.mxu0 }
 0x2cd   :  { %4368 = vmatmul.mubr.msk.f32.vlgmr.msra.gmra.mxu1 %vm74_vm1, %v709_v63  ;;  %v3713_v63 = vld [vmem:[%s6292_s3 + $0x78] sm:$0xff] }
 0x2ce   :  { %4377 = vmatpush3.msra.mxu1 %v5146_v50  ;;  %v4352_v2 = vpop.f32.mrf.mxu0  ;;  %4370 = vmatprep.mubr.msk.f32.mxu1 %vm4952_vm0, %v4951_v0 }
 0x2cf   :  { %4378 = vmatprep.subr.mxu1 %v4951_v0  ;;  %v3714_v2 = vld [vmem:[%s6292_s3 + $0x80] sm:$0xff] }
 0x2d0   :  { %4379 = vmatpush3.msra.mxu1 %v5148_v52  ;;  %v714_v4 = vpop.f32.mrf.mxu0 }
 0x2d1   :  { %4380 = vmatprep.subr.mxu1 %v4951_v0  ;;  %4371 = vmatmul.mubr.msk.f32.gmra.mxu1 %vm74_vm1, %v714_v4  ;;  %v3715_v4 = vld [vmem:[%s6292_s3 + $0x88] sm:$0xff] }
 0x2d2   :  { %4381 = vmatpush3.msra.mxu1 %v5152_v54  ;;  %v4355_v6 = vpop.f32.mrf.mxu0  ;;  %4373 = vmatprep.mubr.msk.f32.mxu1 %vm4952_vm0, %v4951_v0 }
 0x2d3   :  { %4382 = vmatprep.subr.mxu1 %v4951_v0  ;;  %v3722_v6 = vld [vmem:[%s6290_s4 + $0xb8] sm:$0xff] }
 0x2d4   :  { %4383 = vmatpush3.msra.mxu1 %v5156_v56  ;;  %v719_v10 = vpop.f32.mrf.mxu0 }
 0x2d5   :  { %4384 = vmatprep.subr.mxu1 %v4951_v0  ;;  %4374 = vmatmul.mubr.msk.f32.gmra.mxu1 %vm74_vm1, %v719_v10  ;;  %v3721_v10 = vld [vmem:[%s6290_s4 + $0xb0] sm:$0xff] }
 0x2d6   :  { %4385 = vmatpush3.msra.mxu1 %v5160_v58  ;;  %v4358_v11 = vpop.f32.mrf.mxu0  ;;  %4402 = vmatprep.mubr.msk.f32.mxu1 %vm4952_vm0, %v4951_v0 }
 0x2d7   :  { %4386 = vmatprep.subr.mxu1 %v4951_v0  ;;  %v3720_v11 = vld [vmem:[%s6290_s4 + $0xa8] sm:$0xff] }
 0x2d8   :  { %4387 = vmatpush3.msra.mxu1 %v5164_v60 }
 0x2d9   :  { %4388 = vmatprep.subr.mxu1 %v4951_v0 }
 0x2da   :  { %4389 = vmatpush3.msra.mxu1 %v5168_v62 }
 0x2db   :  { %4390 = vmatprep.subr.mxu1 %v4951_v0 }
 0x2dc   :  { %4391 = vmatpush3.msra.mxu1 %v5172_v1 }
 0x2dd   :  { %4392 = vmatprep.subr.mxu1 %v4951_v0 }
 0x2de   :  { %4393 = vmatpush3.msra.mxu1 %v5176_v3 }
 0x2df   :  { %4394 = vmatprep.subr.mxu1 %v4951_v0 }
 0x2e0   :  { %4395 = vmatpush3.msra.mxu1 %v5180_v5 }
 0x2e1   :  { %4396 = vmatprep.subr.mxu1 %v4951_v0 }
 0x2e2   :  { %4397 = vmatpush3.msra.mxu1 %v5185_v7 }
 0x2e3   :  { %4398 = vmatprep.subr.mxu1 %v4951_v0 }
 0x2e4   :  { %4399 = vmatpush3.msra.mxu1 %v5189_v8 }
 0x2e5   :  { %4400 = vmatprep.subr.mxu1 %v4951_v0 }
 0x2e6   :  { %4401 = vmatpush3.msra.mxu1 %v5193_v9 }
 0x2e7   :  { %4403 = vmatmul.mubr.msk.f32.vlgmr.msra.gmra.mxu1 %vm260_vm2, %v3687_v12  ;;  %4463 = vmatprep.subr.mxu1 %v4951_v0  ;;  %v3719_v12 = vld [vmem:[%s6290_s4 + $0xa0] sm:$0xff] }
 0x2e8   :  { %4405 = vmatprep.mubr.msk.f32.mxu1 %vm4952_vm0, %v4951_v0  ;;  %4464 = vmatpush3.msra.mxu1 %v3709_v37 }
 0x2e9   :  { %4465 = vmatprep.subr.mxu1 %v4951_v0 }
 0x2ea   :  { %4466 = vmatpush3.msra.mxu1 %v3708_v38 }
 0x2eb   :  { %4406 = vmatmul.mubr.msk.f32.gmra.mxu1 %vm260_vm2, %v3688_v13  ;;  %4467 = vmatprep.subr.mxu1 %v4951_v0 }
 0x2ec   :  { %4408 = vmatprep.mubr.msk.f32.mxu1 %vm4952_vm0, %v4951_v0  ;;  %4468 = vmatpush3.msra.mxu1 %v3707_v39 }
 0x2ed   :  { %4469 = vmatprep.subr.mxu1 %v4951_v0 }
 0x2ee   :  { %4470 = vmatpush3.msra.mxu1 %v3706_v40 }
 0x2ef   :  { %4409 = vmatmul.mubr.msk.f32.gmra.mxu1 %vm260_vm2, %v3689_v14  ;;  %4480 = vmatprep.subr.mxu1 %v4951_v0 }
 0x2f0   :  { %4471 = vmatprep.mubr.msk.f32.mxu1 %vm4952_vm0, %v4951_v0 }
 0x38d   :  { %v803_v19 = vpop.f32.mrf.mxu1 }
 0x38e   :  { %v5439_v20 = vadd.f32 %v803_v19, %v5363_v48 }
 0x38f   :  { %v4369_v21 = vpop.f32.mrf.mxu1 }
 0x391   :  { %v808_v22 = vpop.f32.mrf.mxu1 }
 0x392   :  { %v5442_v23 = vadd.f32 %v808_v22, %v5365_v53 }
 0x393   :  { %v4372_v24 = vpop.f32.mrf.mxu1 }
 0x395   :  { %v813_v25 = vpop.f32.mrf.mxu1 }
 0x396   :  { %v5445_v26 = vadd.f32 %v813_v25, %v5367_v59 }
 0x397   :  { %v4375_v27 = vpop.f32.mrf.mxu1 }
 0x3a7   :  { %v899_v28 = vpop.f32.mrf.mxu1 }
 0x3a8   :  { %4420 = vmatmul.mubr.msk.f32.vlgmr.msra.gmra.mxu0 %vm74_vm1, %v899_v28  ;;  %v3726_v28 = vld [vmem:[%s6292_s3 + $0x90] sm:$0xff] }
 0x3a9   :  { %4429 = vmatpush3.msra.mxu0 %v5146_v50  ;;  %v4404_v29 = vpop.f32.mrf.mxu1  ;;  %4422 = vmatprep.mubr.msk.f32.mxu0 %vm4952_vm0, %v4951_v0 }
 0x3aa   :  { %4430 = vmatprep.subr.mxu0 %v4951_v0  ;;  %v3727_v29 = vld [vmem:[%s6292_s3 + $0x98] sm:$0xff] }
 0x3ab   :  { %4431 = vmatpush3.msra.mxu0 %v5148_v52  ;;  %v904_v30 = vpop.f32.mrf.mxu1 }
 0x3ac   :  { %4432 = vmatprep.subr.mxu0 %v4951_v0  ;;  %4423 = vmatmul.mubr.msk.f32.gmra.mxu0 %vm74_vm1, %v904_v30  ;;  %v3728_v30 = vld [vmem:[%s6292_s3 + $0xa0] sm:$0xff] }
 0x3ad   :  { %4433 = vmatpush3.msra.mxu0 %v5152_v54  ;;  %v4407_v31 = vpop.f32.mrf.mxu1  ;;  %4425 = vmatprep.mubr.msk.f32.mxu0 %vm4952_vm0, %v4951_v0 }
 0x3ae   :  { %4434 = vmatprep.subr.mxu0 %v4951_v0  ;;  %v3735_v31 = vld [vmem:[%s6290_s4 + $0xd8] sm:$0xff] }
 0x3af   :  { %4435 = vmatpush3.msra.mxu0 %v5156_v56  ;;  %v909_v32 = vpop.f32.mrf.mxu1 }
 0x3b0   :  { %4436 = vmatprep.subr.mxu0 %v4951_v0  ;;  %4426 = vmatmul.mubr.msk.f32.gmra.mxu0 %vm74_vm1, %v909_v32  ;;  %v3734_v32 = vld [vmem:[%s6290_s4 + $0xd0] sm:$0xff] }
 0x3b1   :  { %4437 = vmatpush3.msra.mxu0 %v5160_v58  ;;  %v4410_v33 = vpop.f32.mrf.mxu1  ;;  %4454 = vmatprep.mubr.msk.f32.mxu0 %vm4952_vm0, %v4951_v0 }
 0x3b2   :  { %4438 = vmatprep.subr.mxu0 %v4951_v0  ;;  %v3733_v33 = vld [vmem:[%s6290_s4 + $0xc8] sm:$0xff] }
 0x3b3   :  { %4439 = vmatpush3.msra.mxu0 %v5164_v60 }
 0x3b4   :  { %4440 = vmatprep.subr.mxu0 %v4951_v0 }
 0x3b5   :  { %4441 = vmatpush3.msra.mxu0 %v5168_v62 }
 0x3b6   :  { %4442 = vmatprep.subr.mxu0 %v4951_v0 }
 0x3b7   :  { %4443 = vmatpush3.msra.mxu0 %v5172_v1 }
 0x3b8   :  { %4444 = vmatprep.subr.mxu0 %v4951_v0 }
 0x3b9   :  { %4445 = vmatpush3.msra.mxu0 %v5176_v3 }
 0x3ba   :  { %4446 = vmatprep.subr.mxu0 %v4951_v0 }
 0x3bb   :  { %4447 = vmatpush3.msra.mxu0 %v5180_v5 }
 0x3bc   :  { %4448 = vmatprep.subr.mxu0 %v4951_v0 }
 0x3bd   :  { %4449 = vmatpush3.msra.mxu0 %v5185_v7 }
 0x3be   :  { %4450 = vmatprep.subr.mxu0 %v4951_v0 }
 0x3bf   :  { %4451 = vmatpush3.msra.mxu0 %v5189_v8 }
 0x3c0   :  { %4452 = vmatprep.subr.mxu0 %v4951_v0 }
 0x3c1   :  { %4453 = vmatpush3.msra.mxu0 %v5193_v9 }
 0x3c2   :  { %4455 = vmatmul.mubr.msk.f32.vlgmr.msra.gmra.mxu0 %vm260_vm2, %v3700_v34  ;;  %4515 = vmatprep.subr.mxu0 %v4951_v0  ;;  %v3732_v34 = vld [vmem:[%s6290_s4 + $0xc0] sm:$0xff] }
 0x3c3   :  { %4457 = vmatprep.mubr.msk.f32.mxu0 %vm4952_vm0, %v4951_v0  ;;  %4516 = vmatpush3.msra.mxu0 %v3722_v6 }
 0x3c4   :  { %4517 = vmatprep.subr.mxu0 %v4951_v0 }
 0x3c5   :  { %4518 = vmatpush3.msra.mxu0 %v3721_v10 }
 0x3c6   :  { %4458 = vmatmul.mubr.msk.f32.gmra.mxu0 %vm260_vm2, %v3701_v35  ;;  %4519 = vmatprep.subr.mxu0 %v4951_v0 }
 0x3c7   :  { %4460 = vmatprep.mubr.msk.f32.mxu0 %vm4952_vm0, %v4951_v0  ;;  %4520 = vmatpush3.msra.mxu0 %v3720_v11 }
 0x3c8   :  { %4521 = vmatprep.subr.mxu0 %v4951_v0 }
 0x3c9   :  { %4522 = vmatpush3.msra.mxu0 %v3719_v12 }
 0x3ca   :  { %4461 = vmatmul.mubr.msk.f32.gmra.mxu0 %vm260_vm2, %v3702_v36  ;;  %4532 = vmatprep.subr.mxu0 %v4951_v0 }
 0x3cb   :  { %4523 = vmatprep.mubr.msk.f32.mxu0 %vm4952_vm0, %v4951_v0 }
 0x468   :  { %v993_v41 = vpop.f32.mrf.mxu0 }
 0x469   :  { %v5517_v42 = vadd.f32 %v993_v41, %v5439_v20 }
 0x46a   :  { %v4421_v43 = vpop.f32.mrf.mxu0 }
 0x46c   :  { %v998_v44 = vpop.f32.mrf.mxu0 }
 0x46d   :  { %v5520_v45 = vadd.f32 %v998_v44, %v5442_v23 }
 0x46e   :  { %v4424_v46 = vpop.f32.mrf.mxu0 }
 0x470   :  { %v1003_v47 = vpop.f32.mrf.mxu0 }
 0x471   :  { %v5523_v48 = vadd.f32 %v1003_v47, %v5445_v26 }
 0x472   :  { %v4427_v49 = vpop.f32.mrf.mxu0 }
 0x482   :  { %v1089_v51 = vpop.f32.mrf.mxu0 }
 0x483   :  { %4472 = vmatmul.mubr.msk.f32.vlgmr.msra.gmra.mxu1 %vm74_vm1, %v1089_v51  ;;  %v3739_v51 = vld [vmem:[%s6292_s3 + $0xa8] sm:$0xff] }
 0x484   :  { %4481 = vmatpush3.msra.mxu1 %v5146_v50  ;;  %v4456_v53 = vpop.f32.mrf.mxu0  ;;  %4474 = vmatprep.mubr.msk.f32.mxu1 %vm4952_vm0, %v4951_v0 }
 0x485   :  { %4482 = vmatprep.subr.mxu1 %v4951_v0  ;;  %v3740_v53 = vld [vmem:[%s6292_s3 + $0xb0] sm:$0xff] }
 0x486   :  { %4483 = vmatpush3.msra.mxu1 %v5148_v52  ;;  %v1094_v55 = vpop.f32.mrf.mxu0 }
 0x487   :  { %4484 = vmatprep.subr.mxu1 %v4951_v0  ;;  %4475 = vmatmul.mubr.msk.f32.gmra.mxu1 %vm74_vm1, %v1094_v55  ;;  %v3741_v55 = vld [vmem:[%s6292_s3 + $0xb8] sm:$0xff] }
 0x488   :  { %4485 = vmatpush3.msra.mxu1 %v5152_v54  ;;  %v4459_v57 = vpop.f32.mrf.mxu0  ;;  %4477 = vmatprep.mubr.msk.f32.mxu1 %vm4952_vm0, %v4951_v0 }
 0x489   :  { %4486 = vmatprep.subr.mxu1 %v4951_v0  ;;  %v3748_v57 = vld [vmem:[%s6290_s4 + $0xf8] sm:$0xff] }
 0x48a   :  { %4487 = vmatpush3.msra.mxu1 %v5156_v56  ;;  %v1099_v59 = vpop.f32.mrf.mxu0 }
 0x48b   :  { %4488 = vmatprep.subr.mxu1 %v4951_v0  ;;  %4478 = vmatmul.mubr.msk.f32.gmra.mxu1 %vm74_vm1, %v1099_v59  ;;  %v3747_v59 = vld [vmem:[%s6290_s4 + $0xf0] sm:$0xff] }
 0x48c   :  { %4489 = vmatpush3.msra.mxu1 %v5160_v58  ;;  %v4462_v61 = vpop.f32.mrf.mxu0  ;;  %4506 = vmatprep.mubr.msk.f32.mxu1 %vm4952_vm0, %v4951_v0 }
 0x48d   :  { %4490 = vmatprep.subr.mxu1 %v4951_v0  ;;  %v3746_v61 = vld [vmem:[%s6290_s4 + $0xe8] sm:$0xff] }
 0x48e   :  { %4491 = vmatpush3.msra.mxu1 %v5164_v60 }
 0x48f   :  { %4492 = vmatprep.subr.mxu1 %v4951_v0 }
 0x490   :  { %4493 = vmatpush3.msra.mxu1 %v5168_v62 }
 0x491   :  { %4494 = vmatprep.subr.mxu1 %v4951_v0 }
 0x492   :  { %4495 = vmatpush3.msra.mxu1 %v5172_v1 }
 0x493   :  { %4496 = vmatprep.subr.mxu1 %v4951_v0 }
 0x494   :  { %4497 = vmatpush3.msra.mxu1 %v5176_v3 }
 0x495   :  { %4498 = vmatprep.subr.mxu1 %v4951_v0 }
 0x496   :  { %4499 = vmatpush3.msra.mxu1 %v5180_v5 }
 0x497   :  { %4500 = vmatprep.subr.mxu1 %v4951_v0 }
 0x498   :  { %4501 = vmatpush3.msra.mxu1 %v5185_v7 }
 0x499   :  { %4502 = vmatprep.subr.mxu1 %v4951_v0 }
 0x49a   :  { %4503 = vmatpush3.msra.mxu1 %v5189_v8 }
 0x49b   :  { %4504 = vmatprep.subr.mxu1 %v4951_v0 }
 0x49c   :  { %4505 = vmatpush3.msra.mxu1 %v5193_v9 }
 0x49d   :  { %4507 = vmatmul.mubr.msk.f32.vlgmr.msra.gmra.mxu1 %vm260_vm2, %v3713_v63  ;;  %4567 = vmatprep.subr.mxu1 %v4951_v0  ;;  %v3745_v63 = vld [vmem:[%s6290_s4 + $0xe0] sm:$0xff] }
 0x49e   :  { %4509 = vmatprep.mubr.msk.f32.mxu1 %vm4952_vm0, %v4951_v0  ;;  %4568 = vmatpush3.msra.mxu1 %v3735_v31  ;;  %v3772_v31 = vld [vmem:[%s6293_s7 + $0x38] sm:$0xff] }
 0x49f   :  { %4569 = vmatprep.subr.mxu1 %v4951_v0 }
 0x4a0   :  { %4570 = vmatpush3.msra.mxu1 %v3734_v32  ;;  %v3771_v32 = vld [vmem:[%s6293_s7 + $0x30] sm:$0xff] }
 0x4a1   :  { %4510 = vmatmul.mubr.msk.f32.gmra.mxu1 %vm260_vm2, %v3714_v2  ;;  %4571 = vmatprep.subr.mxu1 %v4951_v0 }
 0x4a2   :  { %4512 = vmatprep.mubr.msk.f32.mxu1 %vm4952_vm0, %v4951_v0  ;;  %4572 = vmatpush3.msra.mxu1 %v3733_v33 }
 0x4a3   :  { %4573 = vmatprep.subr.mxu1 %v4951_v0 }
 0x4a4   :  { %4574 = vmatpush3.msra.mxu1 %v3732_v34 }
 0x4a5   :  { %4513 = vmatmul.mubr.msk.f32.gmra.mxu1 %vm260_vm2, %v3715_v4  ;;  %4584 = vmatprep.subr.mxu1 %v4951_v0 }
 0x4a6   :  { %4575 = vmatprep.mubr.msk.f32.mxu1 %vm4952_vm0, %v4951_v0 }
 0x543   :  { %v1183_v13 = vpop.f32.mrf.mxu1 }
 0x544   :  { %v5595_v14 = vadd.f32 %v1183_v13, %v5517_v42 }
 0x545   :  { %v4473_v15 = vpop.f32.mrf.mxu1 }
 0x547   :  { %v1188_v16 = vpop.f32.mrf.mxu1 }
 0x548   :  { %v5598_v17 = vadd.f32 %v1188_v16, %v5520_v45 }
 0x549   :  { %v4476_v18 = vpop.f32.mrf.mxu1 }
 0x54b   :  { %v1193_v19 = vpop.f32.mrf.mxu1 }
 0x54c   :  { %v5601_v20 = vadd.f32 %v1193_v19, %v5523_v48 }
 0x54d   :  { %v4479_v21 = vpop.f32.mrf.mxu1 }
 0x55d   :  { %v1279_v22 = vpop.f32.mrf.mxu1 }
 0x55e   :  { %4524 = vmatmul.mubr.msk.f32.vlgmr.msra.gmra.mxu0 %vm74_vm1, %v1279_v22 }
 0x55f   :  { %4533 = vmatpush3.msra.mxu0 %v5146_v50  ;;  %v4508_v23 = vpop.f32.mrf.mxu1  ;;  %4526 = vmatprep.mubr.msk.f32.mxu0 %vm4952_vm0, %v4951_v0 }
 0x560   :  { %4534 = vmatprep.subr.mxu0 %v4951_v0 }
 0x561   :  { %4535 = vmatpush3.msra.mxu0 %v5148_v52  ;;  %v1284_v24 = vpop.f32.mrf.mxu1 }
 0x562   :  { %4536 = vmatprep.subr.mxu0 %v4951_v0  ;;  %4527 = vmatmul.mubr.msk.f32.gmra.mxu0 %vm74_vm1, %v1284_v24 }
 0x563   :  { %4537 = vmatpush3.msra.mxu0 %v5152_v54  ;;  %v4511_v25 = vpop.f32.mrf.mxu1  ;;  %4529 = vmatprep.mubr.msk.f32.mxu0 %vm4952_vm0, %v4951_v0 }
 0x564   :  { %4538 = vmatprep.subr.mxu0 %v4951_v0 }
 0x565   :  { %4539 = vmatpush3.msra.mxu0 %v5156_v56  ;;  %v1289_v26 = vpop.f32.mrf.mxu1 }
 0x566   :  { %4540 = vmatprep.subr.mxu0 %v4951_v0  ;;  %4530 = vmatmul.mubr.msk.f32.gmra.mxu0 %vm74_vm1, %v1289_v26 }
 0x567   :  { %4541 = vmatpush3.msra.mxu0 %v5160_v58  ;;  %v4514_v27 = vpop.f32.mrf.mxu1  ;;  %4558 = vmatprep.mubr.msk.f32.mxu0 %vm4952_vm0, %v4951_v0 }
 0x568   :  { %4542 = vmatprep.subr.mxu0 %v4951_v0 }
 0x569   :  { %4543 = vmatpush3.msra.mxu0 %v5164_v60 }
 0x56a   :  { %4544 = vmatprep.subr.mxu0 %v4951_v0 }
 0x56b   :  { %4545 = vmatpush3.msra.mxu0 %v5168_v62 }
 0x56c   :  { %4546 = vmatprep.subr.mxu0 %v4951_v0 }
 0x56d   :  { %4547 = vmatpush3.msra.mxu0 %v5172_v1 }
 0x56e   :  { %4548 = vmatprep.subr.mxu0 %v4951_v0 }
 0x56f   :  { %4549 = vmatpush3.msra.mxu0 %v5176_v3 }
 0x570   :  { %4550 = vmatprep.subr.mxu0 %v4951_v0 }
 0x571   :  { %4551 = vmatpush3.msra.mxu0 %v5180_v5 }
 0x572   :  { %4552 = vmatprep.subr.mxu0 %v4951_v0 }
 0x573   :  { %4553 = vmatpush3.msra.mxu0 %v5185_v7 }
 0x574   :  { %4554 = vmatprep.subr.mxu0 %v4951_v0 }
 0x575   :  { %4555 = vmatpush3.msra.mxu0 %v5189_v8 }
 0x576   :  { %4556 = vmatprep.subr.mxu0 %v4951_v0 }
 0x577   :  { %4557 = vmatpush3.msra.mxu0 %v5193_v9 }
 0x578   :  { %4559 = vmatmul.mubr.msk.f32.vlgmr.msra.gmra.mxu0 %vm260_vm2, %v3726_v28  ;;  %4619 = vmatprep.subr.mxu0 %v4951_v0 }
 0x579   :  { %4561 = vmatprep.mubr.msk.f32.mxu0 %vm4952_vm0, %v4951_v0  ;;  %4620 = vmatpush3.msra.mxu0 %v3748_v57  ;;  %v2049_v57 = vld [vmem:[%s6293_s7 + $0x8] sm:$0xff] }
 0x57a   :  { %4621 = vmatprep.subr.mxu0 %v4951_v0 }
 0x57b   :  { %4622 = vmatpush3.msra.mxu0 %v3747_v59  ;;  %v2048_v59 = vld [vmem:[%s6293_s7] sm:$0xff] }
 0x57c   :  { %4562 = vmatmul.mubr.msk.f32.gmra.mxu0 %vm260_vm2, %v3727_v29  ;;  %4623 = vmatprep.subr.mxu0 %v4951_v0 }
 0x57d   :  { %4564 = vmatprep.mubr.msk.f32.mxu0 %vm4952_vm0, %v4951_v0  ;;  %4624 = vmatpush3.msra.mxu0 %v3746_v61  ;;  %v3770_v61 = vld [vmem:[%s6293_s7 + $0x28] sm:$0xff] }
 0x57e   :  { %4625 = vmatprep.subr.mxu0 %v4951_v0 }
 0x57f   :  { %4626 = vmatpush3.msra.mxu0 %v3745_v63  ;;  %v3769_v63 = vld [vmem:[%s6293_s7 + $0x20] sm:$0xff] }
 0x580   :  { %4565 = vmatmul.mubr.msk.f32.gmra.mxu0 %vm260_vm2, %v3728_v30  ;;  %4636 = vmatprep.subr.mxu0 %v4951_v0 }
 0x581   :  { %4627 = vmatprep.mubr.msk.f32.mxu0 %vm4952_vm0, %v4951_v0 }
 0x61e   :  { %v1373_v35 = vpop.f32.mrf.mxu0 }
 0x61f   :  { %v5673_v36 = vadd.f32 %v1373_v35, %v5595_v14 }
 0x620   :  { %v4525_v37 = vpop.f32.mrf.mxu0 }
 0x622   :  { %v1378_v38 = vpop.f32.mrf.mxu0 }
 0x623   :  { %v5676_v39 = vadd.f32 %v1378_v38, %v5598_v17 }
 0x624   :  { %v4528_v40 = vpop.f32.mrf.mxu0 }
 0x626   :  { %v1383_v41 = vpop.f32.mrf.mxu0 }
 0x627   :  { %v5679_v42 = vadd.f32 %v1383_v41, %v5601_v20  ;;  %v3765_v41 = vld [vmem:[%s6294_s5] ss:$0 sm:$0xff] }
 0x628   :  { %v4531_v43 = vpop.f32.mrf.mxu0 }
 0x638   :  { %v1469_v44 = vpop.f32.mrf.mxu0 }
 0x639   :  { %4576 = vmatmul.mubr.msk.f32.vlgmr.msra.gmra.mxu1 %vm74_vm1, %v1469_v44 }
 0x63a   :  { %4585 = vmatpush3.msra.mxu1 %v5146_v50  ;;  %v4560_v45 = vpop.f32.mrf.mxu0  ;;  %4578 = vmatprep.mubr.msk.f32.mxu1 %vm4952_vm0, %v4951_v0 }
 0x63b   :  { %4586 = vmatprep.subr.mxu1 %v4951_v0 }
 0x63c   :  { %4587 = vmatpush3.msra.mxu1 %v5148_v52  ;;  %v1474_v46 = vpop.f32.mrf.mxu0 }
 0x63d   :  { %4588 = vmatprep.subr.mxu1 %v4951_v0  ;;  %4579 = vmatmul.mubr.msk.f32.gmra.mxu1 %vm74_vm1, %v1474_v46 }
 0x63e   :  { %4589 = vmatpush3.msra.mxu1 %v5152_v54  ;;  %v4563_v47 = vpop.f32.mrf.mxu0  ;;  %4581 = vmatprep.mubr.msk.f32.mxu1 %vm4952_vm0, %v4951_v0 }
 0x63f   :  { %4590 = vmatprep.subr.mxu1 %v4951_v0 }
 0x640   :  { %4591 = vmatpush3.msra.mxu1 %v5156_v56  ;;  %v1479_v48 = vpop.f32.mrf.mxu0 }
 0x641   :  { %4592 = vmatprep.subr.mxu1 %v4951_v0  ;;  %4582 = vmatmul.mubr.msk.f32.gmra.mxu1 %vm74_vm1, %v1479_v48 }
 0x642   :  { %4593 = vmatpush3.msra.mxu1 %v5160_v58  ;;  %v4566_v49 = vpop.f32.mrf.mxu0  ;;  %4610 = vmatprep.mubr.msk.f32.mxu1 %vm4952_vm0, %v4951_v0 }
 0x643   :  { %4594 = vmatprep.subr.mxu1 %v4951_v0  ;;  %v1973_v49 = vld [vmem:[%s6295_s6] sm:$0xff] }
 0x644   :  { %4595 = vmatpush3.msra.mxu1 %v5164_v60 }
 0x645   :  { %4596 = vmatprep.subr.mxu1 %v4951_v0 }
 0x646   :  { %4597 = vmatpush3.msra.mxu1 %v5168_v62 }
 0x647   :  { %4598 = vmatprep.subr.mxu1 %v4951_v0 }
 0x648   :  { %4599 = vmatpush3.msra.mxu1 %v5172_v1 }
 0x649   :  { %4600 = vmatprep.subr.mxu1 %v4951_v0 }
 0x64a   :  { %4601 = vmatpush3.msra.mxu1 %v5176_v3 }
 0x64b   :  { %4602 = vmatprep.subr.mxu1 %v4951_v0 }
 0x64c   :  { %4603 = vmatpush3.msra.mxu1 %v5180_v5 }
 0x64d   :  { %4604 = vmatprep.subr.mxu1 %v4951_v0 }
 0x64e   :  { %4605 = vmatpush3.msra.mxu1 %v5185_v7 }
 0x64f   :  { %4606 = vmatprep.subr.mxu1 %v4951_v0 }
 0x650   :  { %4607 = vmatpush3.msra.mxu1 %v5189_v8 }
 0x651   :  { %4608 = vmatprep.subr.mxu1 %v4951_v0 }
 0x652   :  { %4609 = vmatpush3.msra.mxu1 %v5193_v9 }
 0x653   :  { %4611 = vmatmul.mubr.msk.f32.vlgmr.msra.gmra.mxu1 %vm260_vm2, %v3739_v51  ;;  %4671 = vmatprep.subr.mxu1 %v4951_v0  ;;  %v3767_v51 = vld [vmem:[%s6295_s6 + $0x8] sm:$0xff] }
 0x654   :  { %4613 = vmatprep.mubr.msk.f32.mxu1 %vm4952_vm0, %v4951_v0 }
 0x657   :  { %4614 = vmatmul.mubr.msk.f32.gmra.mxu1 %vm260_vm2, %v3740_v53  ;;  %v2051_v53 = vld [vmem:[%s6293_s7 + $0x18] sm:$0xff] }
 0x658   :  { %4616 = vmatprep.mubr.msk.f32.mxu1 %vm4952_vm0, %v4951_v0 }
 0x65b   :  { %4617 = vmatmul.mubr.msk.f32.gmra.mxu1 %vm260_vm2, %v3741_v55  ;;  %v2050_v55 = vld [vmem:[%s6293_s7 + $0x10] sm:$0xff] }
 0x65c   :  { %4679 = vmatprep.mubr.msk.f32.mxu1 %vm4952_vm0, %v4951_v0 }
 0x6f9   :  { %v1563_v2 = vpop.f32.mrf.mxu1 }
 0x6fa   :  { %v5751_v4 = vadd.f32 %v1563_v2, %v5673_v36  ;;  %v3780_v2 = vld [vmem:[%s6293_s7 + $0x58] sm:$0xff] }
 0x6fb   :  { %v4577_v6 = vpop.f32.mrf.mxu1 }
 0x6fd   :  { %v1568_v10 = vpop.f32.mrf.mxu1 }
 0x6fe   :  { %v5754_v11 = vadd.f32 %v1568_v10, %v5676_v39 }
 0x6ff   :  { %v4580_v12 = vpop.f32.mrf.mxu1 }
 0x700   :  { %v3775_v12 = vld [vmem:[%s6295_s6 + $0x10] sm:$0xff] }
 0x701   :  { %v1573_v13 = vpop.f32.mrf.mxu1 }
 0x702   :  { %v5757_v14 = vadd.f32 %v1573_v13, %v5679_v42  ;;  %v3782_v13 = vld [vmem:[%s6295_s6 + $0x18] sm:$0xff] }
 0x703   :  { %v4583_v15 = vpop.f32.mrf.mxu1 }
 0x704   :  { %v3778_v15 = vld [vmem:[%s6293_s7 + $0x48] sm:$0xff] }
 0x713   :  { %v1659_v16 = vpop.f32.mrf.mxu1 }
 0x714   :  { %4628 = vmatmul.mubr.msk.f32.vlgmr.msra.gmra.mxu0 %vm74_vm1, %v1659_v16  ;;  %v3777_v16 = vld [vmem:[%s6293_s7 + $0x40] sm:$0xff] }
 0x715   :  { %4637 = vmatpush3.msra.mxu0 %v5146_v50  ;;  %v4612_v17 = vpop.f32.mrf.mxu1  ;;  %4630 = vmatprep.mubr.msk.f32.mxu0 %vm4952_vm0, %v4951_v0 }
 0x716   :  { %4638 = vmatprep.subr.mxu0 %v4951_v0  ;;  %v3787_v17 = vld [vmem:[%s6293_s7 + $0x78] sm:$0xff] }
 0x717   :  { %4639 = vmatpush3.msra.mxu0 %v5148_v52  ;;  %v1664_v18 = vpop.f32.mrf.mxu1 }
 0x718   :  { %4640 = vmatprep.subr.mxu0 %v4951_v0  ;;  %4631 = vmatmul.mubr.msk.f32.gmra.mxu0 %vm74_vm1, %v1664_v18  ;;  %v3786_v18 = vld [vmem:[%s6293_s7 + $0x70] sm:$0xff] }
 0x719   :  { %4641 = vmatpush3.msra.mxu0 %v5152_v54  ;;  %v4615_v19 = vpop.f32.mrf.mxu1  ;;  %4633 = vmatprep.mubr.msk.f32.mxu0 %vm4952_vm0, %v4951_v0  ;;  %v3752_v54 = vld [vmem:[%s6292_s3 + $0xc0] sm:$0xff] }
 0x71a   :  { %4642 = vmatprep.subr.mxu0 %v4951_v0  ;;  %v3785_v19 = vld [vmem:[%s6293_s7 + $0x68] sm:$0xff] }
 0x71b   :  { %4643 = vmatpush3.msra.mxu0 %v5156_v56  ;;  %v1669_v50 = vpop.f32.mrf.mxu1  ;;  %v3753_v56 = vld [vmem:[%s6292_s3 + $0xc8] sm:$0xff] }
 0x71c   :  { %4644 = vmatprep.subr.mxu0 %v4951_v0  ;;  %4634 = vmatmul.mubr.msk.f32.gmra.mxu0 %vm74_vm1, %v1669_v50  ;;  %v3784_v50 = vld [vmem:[%s6293_s7 + $0x60] sm:$0xff] }
 0x71d   :  { %4645 = vmatpush3.msra.mxu0 %v5160_v58  ;;  %v4618_v52 = vpop.f32.mrf.mxu1  ;;  %4662 = vmatprep.mubr.msk.f32.mxu0 %vm4952_vm0, %v4951_v0  ;;  %v3754_v58 = vld [vmem:[%s6292_s3 + $0xd0] sm:$0xff] }
 0x71e   :  { %4646 = vmatprep.subr.mxu0 %v4951_v0 }
 0x71f   :  { %4647 = vmatpush3.msra.mxu0 %v5164_v60  ;;  %v3761_v60 = vld [vmem:[%s6290_s4 + $0x118] sm:$0xff] }
 0x720   :  { %4648 = vmatprep.subr.mxu0 %v4951_v0  ;;  %4672 = vmatpush3.msra.mxu1 %v3761_v60 }
 0x721   :  { %4649 = vmatpush3.msra.mxu0 %v5168_v62  ;;  %v3760_v62 = vld [vmem:[%s6290_s4 + $0x110] sm:$0xff]  ;;  %4673 = vmatprep.subr.mxu1 %v4951_v0 }
 0x722   :  { %4650 = vmatprep.subr.mxu0 %v4951_v0  ;;  %4674 = vmatpush3.msra.mxu1 %v3760_v62 }
 0x723   :  { %4651 = vmatpush3.msra.mxu0 %v5172_v1  ;;  %v3759_v1 = vld [vmem:[%s6290_s4 + $0x108] sm:$0xff]  ;;  %4675 = vmatprep.subr.mxu1 %v4951_v0 }
 0x724   :  { %4652 = vmatprep.subr.mxu0 %v4951_v0  ;;  %4676 = vmatpush3.msra.mxu1 %v3759_v1 }
 0x725   :  { %4653 = vmatpush3.msra.mxu0 %v5176_v3  ;;  %4677 = vmatprep.subr.mxu1 %v4951_v0  ;;  %v3758_v3 = vld [vmem:[%s6290_s4 + $0x100] sm:$0xff] }
 0x726   :  { %4654 = vmatprep.subr.mxu0 %v4951_v0  ;;  %4678 = vmatpush3.msra.mxu1 %v3758_v3  ;;  %v3789_v3 = vld [vmem:[%s6295_s6 + $0x20] sm:$0xff] }
 0x727   :  { %4655 = vmatpush3.msra.mxu0 %v5180_v5  ;;  %4688 = vmatprep.subr.mxu1 %v4951_v0 }
 0x728   :  { %4656 = vmatprep.subr.mxu0 %v4951_v0 }
 0x729   :  { %4657 = vmatpush3.msra.mxu0 %v5185_v7 }
 0x72a   :  { %4658 = vmatprep.subr.mxu0 %v4951_v0 }
 0x72b   :  { %4659 = vmatpush3.msra.mxu0 %v5189_v8 }
 0x72c   :  { %4660 = vmatprep.subr.mxu0 %v4951_v0 }
 0x72d   :  { %4661 = vmatpush3.msra.mxu0 %v5193_v9 }
 0x72e   :  { %4663 = vmatmul.mubr.msk.f32.vlgmr.msra.gmra.mxu0 %vm260_vm2, %v3752_v54  ;;  %4706 = vmatprep.subr.mxu0 %v4951_v0 }
 0x72f   :  { %4665 = vmatprep.mubr.msk.f32.mxu0 %vm4952_vm0, %v4951_v0  ;;  %4707 = vmatpush3.msra.mxu0 %v3772_v31 }
 0x730   :  { %4708 = vmatprep.subr.mxu0 %v4951_v0 }
 0x731   :  { %4709 = vmatpush3.msra.mxu0 %v3771_v32 }
 0x732   :  { %4666 = vmatmul.mubr.msk.f32.gmra.mxu0 %vm260_vm2, %v3753_v56  ;;  %4710 = vmatprep.subr.mxu0 %v4951_v0 }
 0x733   :  { %4668 = vmatprep.mubr.msk.f32.mxu0 %vm4952_vm0, %v4951_v0  ;;  %4711 = vmatpush3.msra.mxu0 %v3770_v61 }
 0x734   :  { %4712 = vmatprep.subr.mxu0 %v4951_v0 }
 0x735   :  { %4713 = vmatpush3.msra.mxu0 %v3769_v63 }
 0x736   :  { %4669 = vmatmul.mubr.msk.f32.gmra.mxu0 %vm260_vm2, %v3754_v58  ;;  %4728 = vmatprep.subr.mxu0 %v4951_v0 }
 0x737   :  { %4714 = vmatprep.mubr.msk.f32.mxu0 %vm4952_vm0, %v4951_v0 }
 0x7d4   :  { %v1753_v5 = vpop.f32.mrf.mxu0 }
 0x7d5   :  { %v1767_v7 = vadd.f32 %v1753_v5, %v5751_v4 }
 0x7d6   :  { %v4629_v8 = vpop.f32.mrf.mxu0 }
 0x7d8   :  { %v1758_v9 = vpop.f32.mrf.mxu0 }
 0x7d9   :  { %v1768_v20 = vadd.f32 %v1758_v9, %v5754_v11  ;;  %v3796_v9 = vld [vmem:[%s6295_s6 + $0x28] sm:$0xff] }
 0x7da   :  { %v4632_v21 = vpop.f32.mrf.mxu0 }
 0x7db   :  { %v3792_v21 = vld [vmem:[%s6293_s7 + $0x88] sm:$0xff] }
 0x7dc   :  { %v1763_v22 = vpop.f32.mrf.mxu0 }
 0x7dd   :  { %v1769_v23 = vadd.f32 %v1763_v22, %v5757_v14  ;;  %v3779_v14 = vld [vmem:[%s6293_s7 + $0x50] sm:$0xff]  ;;  %v3791_v22 = vld [vmem:[%s6293_s7 + $0x80] sm:$0xff] }
 0x7de   :  { %v4635_v24 = vpop.f32.mrf.mxu0 }
 0x7df   :  { %v3800_v24 = vld [vmem:[%s6293_s7 + $0xb0] sm:$0xff] }
 0x7ee   :  { %v1849_v25 = vpop.f32.mrf.mxu0 }
 0x7ef   :  { %4680 = vmatmul.mubr.msk.f32.vlgmr.msra.gmra.mxu1 %vm74_vm1, %v1849_v25  ;;  %v3799_v25 = vld [vmem:[%s6293_s7 + $0xa8] sm:$0xff] }
 0x7f0   :  { %v4664_v26 = vpop.f32.mrf.mxu0  ;;  %4682 = vmatprep.mubr.msk.f32.mxu1 %vm4952_vm0, %v4951_v0 }
 0x7f1   :  { %v3798_v26 = vld [vmem:[%s6293_s7 + $0xa0] sm:$0xff] }
 0x7f2   :  { %v1854_v27 = vpop.f32.mrf.mxu0 }
 0x7f3   :  { %4683 = vmatmul.mubr.msk.f32.gmra.mxu1 %vm74_vm1, %v1854_v27 }
 0x7f4   :  { %v4667_v28 = vpop.f32.mrf.mxu0  ;;  %4685 = vmatprep.mubr.msk.f32.mxu1 %vm4952_vm0, %v4951_v0 }
 0x7f6   :  { %v1859_v29 = vpop.f32.mrf.mxu0 }
 0x7f7   :  { %4686 = vmatmul.mubr.msk.f32.gmra.mxu1 %vm74_vm1, %v1859_v29 }
 0x7f8   :  { %v4670_v30 = vpop.f32.mrf.mxu0  ;;  %4694 = vmatprep.mubr.msk.f32.mxu1 %vm4952_vm0, %v4951_v0 }
 0x8af   :  { %v1943_v33 = vpop.f32.mrf.mxu1 }
 0x8b0   :  { %v1957_v39 = vadd.f32 %v1943_v33, %v1767_v7  ;;  %v3794_v7 = vld [vmem:[%s6293_s7 + $0x98] sm:$0xff] }
 0x8b1   :  { %v4681_v34 = vpop.f32.mrf.mxu1 }
 0x8b2   :  { %v1967_v45 = vadd.f32 %v3765_v41, %v1957_v39  ;;  %v3810_v39 = vld [vmem:[%s6295_s6 + $0x38] sm:$0xff] }
 0x8b3   :  { %v1948_v35 = vpop.f32.mrf.mxu1 }
 0x8b4   :  { %v1958_v37 = vadd.f32 %v1948_v35, %v1768_v20  ;;  %v5857_v48 = vmax.f32 %v1967_v45, 0.0  ;;  %v3793_v20 = vld [vmem:[%s6293_s7 + $0x90] sm:$0xff]  ;;  %v3813_v45 = vld [vmem:[%s6293_s7 + $0xe8] sm:$0xff] }
 0x8b5   :  { %v4684_v36 = vpop.f32.mrf.mxu1  ;;  %v3803_v35 = vld [vmem:[%s6295_s6 + $0x30] sm:$0xff] }
 0x8b6   :  { %v1968_v43 = vadd.f32 %v3765_v41, %v1958_v37  ;;  %v3808_v37 = vld [vmem:[%s6293_s7 + $0xd8] sm:$0xff] }
 0x8b7   :  { %v1953_v38 = vpop.f32.mrf.mxu1 }
 0x8b8   :  { %v1959_v40 = vadd.f32 %v1953_v38, %v1769_v23  ;;  %v5853_v47 = vmax.f32 %v1968_v43, 0.0  ;;  %v3801_v23 = vld [vmem:[%s6293_s7 + $0xb8] sm:$0xff] }
 0x8b9   :  { %v4687_v42 = vpop.f32.mrf.mxu1  ;;  %v3815_v43 = vld [vmem:[%s6293_s7 + $0xf8] sm:$0xff] }
 0x8ba   :  { %v1969_v44 = vadd.f32 %v3765_v41, %v1959_v40  ;;  %v3807_v40 = vld [vmem:[%s6293_s7 + $0xd0] sm:$0xff]  ;;  %v3806_v41 = vld [vmem:[%s6293_s7 + $0xc8] sm:$0xff]  ;;  %v3805_v42 = vld [vmem:[%s6293_s7 + $0xc0] sm:$0xff] }
 0x8bc   :  { %v5851_v46 = vmax.f32 %v1969_v44, 0.0  ;;  %v3814_v44 = vld [vmem:[%s6293_s7 + $0xf0] sm:$0xff] }
 0x8be   :  { %4689 = vmatpush3.msra.mxu1 %v5851_v46 }
 0x8bf   :  { %4690 = vmatprep.subr.mxu1 %v4951_v0 }
 0x8c0   :  { %4691 = vmatpush3.msra.mxu1 %v5853_v47 }
 0x8c1   :  { %4692 = vmatprep.subr.mxu1 %v4951_v0 }
 0x8c2   :  { %4693 = vmatpush3.msra.mxu1 %v5857_v48 }
 0x8c3   :  { %4697 = vmatprep.subr.mxu1 %v4951_v0  ;;  %4695 = vmatmul.mubr.msk.f32.vlgmr.msra.gmra.mxu1 %vm1974_vm3, %v1973_v49  ;;  %v3812_v49 = vld [vmem:[%s6293_s7 + $0xe0] sm:$0xff] }
 0x8c4   :  { %4698 = vmatpush3.msra.mxu1 %v5851_v46  ;;  %4703 = vmatprep.mubr.msk.f32.mxu1 %vm4952_vm0, %v4951_v0 }
 0x8c5   :  { %4699 = vmatprep.subr.mxu1 %v4951_v0 }
 0x8c6   :  { %4700 = vmatpush3.msra.mxu1 %v5853_v47 }
 0x8c7   :  { %4701 = vmatprep.subr.mxu1 %v4951_v0 }
 0x8c8   :  { %4702 = vmatpush3.msra.mxu1 %v5857_v48 }
 0x8c9   :  { %4704 = vmatmul.mubr.msk.f32.vlgmr.msra.gmra.mxu1 %vm1974_vm3, %v3767_v51  ;;  %4717 = vmatprep.subr.mxu1 %v4951_v0 }
 0x8ca   :  { %4718 = vmatpush3.msra.mxu1 %v2051_v53  ;;  %4725 = vmatprep.mubr.msk.f32.mxu1 %vm4952_vm0, %v4951_v0 }
 0x8cb   :  { %4719 = vmatprep.subr.mxu1 %v4951_v0 }
 0x8cc   :  { %4720 = vmatpush3.msra.mxu1 %v2050_v55 }
 0x8cd   :  { %4721 = vmatprep.subr.mxu1 %v4951_v0 }
 0x8ce   :  { %4722 = vmatpush3.msra.mxu1 %v2049_v57 }
 0x8cf   :  { %4723 = vmatprep.subr.mxu1 %v4951_v0 }
 0x8d0   :  { %4724 = vmatpush3.msra.mxu1 %v2048_v59 }
 0x8d1   :  { %4737 = vmatprep.subr.mxu1 %v4951_v0 }
 0x983   :  { %v2044_v4 = vpop.f32.mrf.mxu1 }
 0x984   :  { %4726 = vmatmul.mubr.msk.f32.vlgmr.msra.gmra.mxu1 %vm74_vm1, %v2044_v4  ;;  %v3817_v4 = vld [vmem:[%s6295_s6 + $0x40] sm:$0xff] }
 0x985   :  { %v4696_v6 = vpop.f32.mrf.mxu1  ;;  %4738 = vmatpush3.msra.mxu1 %v3780_v2  ;;  %4745 = vmatprep.mubr.msk.f32.mxu1 %vm4952_vm0, %v4951_v0 }
 0x986   :  { %4739 = vmatprep.subr.mxu1 %v4951_v0 }
 0x987   :  { %4740 = vmatpush3.msra.mxu1 %v3779_v14 }
 0x988   :  { %4741 = vmatprep.subr.mxu1 %v4951_v0 }
 0x989   :  { %v2123_v10 = vpop.f32.mrf.mxu1  ;;  %4742 = vmatpush3.msra.mxu1 %v3778_v15 }
 0x98a   :  { %4715 = vmatmul.mubr.msk.f32.vlgmr.msra.gmra.mxu0 %vm74_vm1, %v2123_v10  ;;  %4743 = vmatprep.subr.mxu1 %v4951_v0  ;;  %v3820_v10 = vld [vmem:[%s6293_s7 + $0x108] sm:$0xff] }
 0x98b   :  { %4729 = vmatpush3.msra.mxu0 %v5851_v46  ;;  %4734 = vmatprep.mubr.msk.f32.mxu0 %vm4952_vm0, %v4951_v0  ;;  %v4705_v11 = vpop.f32.mrf.mxu1 }
 0x98c   :  { %4730 = vmatprep.subr.mxu0 %v4951_v0  ;;  %4744 = vmatpush3.msra.mxu1 %v3777_v16  ;;  %v3819_v11 = vld [vmem:[%s6293_s7 + $0x100] sm:$0xff] }
 0x98d   :  { %4731 = vmatpush3.msra.mxu0 %v5853_v47  ;;  %4768 = vmatprep.subr.mxu1 %v4951_v0 }
 0x98e   :  { %4732 = vmatprep.subr.mxu0 %v4951_v0 }
 0x98f   :  { %4733 = vmatpush3.msra.mxu0 %v5857_v48 }
 0x990   :  { %4735 = vmatmul.mubr.msk.f32.vlgmr.msra.gmra.mxu0 %vm1974_vm3, %v3775_v12  ;;  %4748 = vmatprep.subr.mxu0 %v4951_v0  ;;  %v3367_v12 = vld [vmem:[%s6296_s9 + $0x18] sm:$0xff] }
 0x991   :  { %4749 = vmatpush3.msra.mxu0 %v5851_v46  ;;  %4754 = vmatprep.mubr.msk.f32.mxu0 %vm4952_vm0, %v4951_v0 }
 0x992   :  { %4750 = vmatprep.subr.mxu0 %v4951_v0 }
 0x993   :  { %4751 = vmatpush3.msra.mxu0 %v5853_v47 }
 0x994   :  { %4752 = vmatprep.subr.mxu0 %v4951_v0 }
 0x995   :  { %4753 = vmatpush3.msra.mxu0 %v5857_v48 }
 0x996   :  { %4755 = vmatmul.mubr.msk.f32.vlgmr.msra.gmra.mxu0 %vm1974_vm3, %v3782_v13  ;;  %4757 = vmatprep.subr.mxu0 %v4951_v0 }
 0x997   :  { %4765 = vmatprep.mubr.msk.f32.mxu0 %vm4952_vm0, %v4951_v0  ;;  %4758 = vmatpush3.msra.mxu0 %v3787_v17 }
 0x998   :  { %4759 = vmatprep.subr.mxu0 %v4951_v0 }
 0x999   :  { %4760 = vmatpush3.msra.mxu0 %v3786_v18 }
 0x99a   :  { %4761 = vmatprep.subr.mxu0 %v4951_v0 }
 0x99b   :  { %4762 = vmatpush3.msra.mxu0 %v3785_v19 }
 0x99c   :  { %4763 = vmatprep.subr.mxu0 %v4951_v0 }
 0x99d   :  { %4764 = vmatpush3.msra.mxu0 %v3784_v50 }
 0x99e   :  { %4788 = vmatprep.subr.mxu0 %v4951_v0 }
 0xa44   :  { %v2274_v52 = vpop.f32.mrf.mxu1 }
 0xa46   :  { %v4727_v54 = vpop.f32.mrf.mxu1 }
 0xa47   :  { %v3365_v54 = vld [vmem:[%s6296_s9 + $0x8] sm:$0xff] }
 0xa4a   :  { %v2201_v56 = vpop.f32.mrf.mxu0 }
 0xa4b   :  { %v2275_v58 = vadd.f32 %v2274_v52, %v2201_v56  ;;  %v3366_v52 = vld [vmem:[%s6296_s9 + $0x10] sm:$0xff]  ;;  %v3364_v56 = vld [vmem:[%s6296_s9] sm:$0xff] }
 0xa4c   :  { %v4716_v60 = vpop.f32.mrf.mxu0 }
 0xa4d   :  { %v3463_v60 = vld [vmem:[%s6297_s11 + $0x70] sm:$0xff] }
 0xa50   :  { %v2349_v62 = vpop.f32.mrf.mxu0 }
 0xa51   :  { %4746 = vmatmul.mubr.msk.f32.vlgmr.msra.gmra.mxu1 %vm74_vm1, %v2349_v62  ;;  %v3462_v62 = vld [vmem:[%s6297_s11 + $0x68] sm:$0xff] }
 0xa52   :  { %4769 = vmatpush3.msra.mxu1 %v5851_v46  ;;  %v4736_v1 = vpop.f32.mrf.mxu0  ;;  %4774 = vmatprep.mubr.msk.f32.mxu1 %vm4952_vm0, %v4951_v0 }
 0xa53   :  { %4770 = vmatprep.subr.mxu1 %v4951_v0  ;;  %v3461_v1 = vld [vmem:[%s6297_s11 + $0x60] sm:$0xff] }
 0xa54   :  { %4771 = vmatpush3.msra.mxu1 %v5853_v47 }
 0xa55   :  { %4772 = vmatprep.subr.mxu1 %v4951_v0 }
 0xa56   :  { %4773 = vmatpush3.msra.mxu1 %v5857_v48  ;;  %v2503_v5 = vpop.f32.mrf.mxu0 }
 0xa57   :  { %4775 = vmatmul.mubr.msk.f32.vlgmr.msra.gmra.mxu1 %vm1974_vm3, %v3789_v3  ;;  %4766 = vmatmul.mubr.msk.f32.vlgmr.msra.gmra.mxu0 %vm74_vm1, %v2503_v5  ;;  %v3460_v3 = vld [vmem:[%s6297_s11 + $0x58] sm:$0xff]  ;;  %v3459_v5 = vld [vmem:[%s6297_s11 + $0x50] sm:$0xff] }
 0xa58   :  { %4789 = vmatpush3.msra.mxu0 %v5851_v46  ;;  %4794 = vmatprep.mubr.msk.f32.mxu0 %vm4952_vm0, %v4951_v0  ;;  %v4756_v8 = vpop.f32.mrf.mxu0 }
 0xa59   :  { %4790 = vmatprep.subr.mxu0 %v4951_v0  ;;  %4777 = vmatprep.subr.mxu1 %v4951_v0  ;;  %v3457_v8 = vld [vmem:[%s6297_s11 + $0x40] sm:$0xff] }
 0xa5a   :  { %4791 = vmatpush3.msra.mxu0 %v5853_v47  ;;  %4778 = vmatpush3.msra.mxu1 %v3794_v7  ;;  %v3458_v7 = vld [vmem:[%s6297_s11 + $0x48] sm:$0xff] }
 0xa5b   :  { %4792 = vmatprep.subr.mxu0 %v4951_v0  ;;  %4779 = vmatprep.subr.mxu1 %v4951_v0 }
 0xa5c   :  { %4793 = vmatpush3.msra.mxu0 %v5857_v48  ;;  %4785 = vmatprep.mubr.msk.f32.mxu1 %vm4952_vm0, %v4951_v0 }
 0xa5d   :  { %4795 = vmatmul.mubr.msk.f32.vlgmr.msra.gmra.mxu0 %vm1974_vm3, %v3796_v9  ;;  %4797 = vmatprep.subr.mxu0 %v4951_v0  ;;  %v3456_v9 = vld [vmem:[%s6297_s11 + $0x38] sm:$0xff] }
 0xa5e   :  { %4805 = vmatprep.mubr.msk.f32.mxu0 %vm4952_vm0, %v4951_v0  ;;  %4780 = vmatpush3.msra.mxu1 %v3793_v20  ;;  %v3455_v20 = vld [vmem:[%s6297_s11 + $0x30] sm:$0xff] }
 0xa5f   :  { %4781 = vmatprep.subr.mxu1 %v4951_v0  ;;  %4798 = vmatpush3.msra.mxu0 %v3801_v23  ;;  %v3452_v23 = vld [vmem:[%s6297_s11 + $0x18] sm:$0xff] }
 0xa60   :  { %4782 = vmatpush3.msra.mxu1 %v3792_v21  ;;  %4799 = vmatprep.subr.mxu0 %v4951_v0  ;;  %v3454_v21 = vld [vmem:[%s6297_s11 + $0x28] sm:$0xff] }
 0xa61   :  { %4783 = vmatprep.subr.mxu1 %v4951_v0  ;;  %4800 = vmatpush3.msra.mxu0 %v3800_v24 }
 0xa62   :  { %4784 = vmatpush3.msra.mxu1 %v3791_v22  ;;  %4801 = vmatprep.subr.mxu0 %v4951_v0  ;;  %v3453_v22 = vld [vmem:[%s6297_s11 + $0x20] sm:$0xff] }
 0xa63   :  { %4808 = vmatprep.subr.mxu1 %v4951_v0  ;;  %4802 = vmatpush3.msra.mxu0 %v3799_v25  ;;  %v3824_v25 = vld [vmem:[%s6298_s8] ss:$0 sm:$0xff] }
 0xa64   :  { %4803 = vmatprep.subr.mxu0 %v4951_v0 }
 0xa65   :  { %4804 = vmatpush3.msra.mxu0 %v3798_v26 }
 0xa66   :  { %4828 = vmatprep.subr.mxu0 %v4951_v0 }
 0xb11   :  { %v2427_v27 = vpop.f32.mrf.mxu1 }
 0xb12   :  { %v2431_v28 = vadd.f32 %v2427_v27, %v2275_v58  ;;  %v3464_v58 = vld [vmem:[%s6297_s11 + $0x78] sm:$0xff] }
 0xb13   :  { %v4747_v29 = vpop.f32.mrf.mxu1 }
 0xb14   :  { %v3451_v29 = vld [vmem:[%s6297_s11 + $0x10] sm:$0xff] }
 0xb17   :  { %v2657_v30 = vpop.f32.mrf.mxu1  ;;  %v2581_v31 = vpop.f32.mrf.mxu0 }
 0xb18   :  { %v2585_v32 = vadd.f32 %v2581_v31, %v2431_v28  ;;  %4786 = vmatmul.mubr.msk.f32.vlgmr.msra.gmra.mxu1 %vm74_vm1, %v2657_v30  ;;  %v3450_v30 = vld [vmem:[%s6297_s11 + $0x8] sm:$0xff]  ;;  %v3449_v31 = vld [vmem:[%s6297_s11] sm:$0xff] }
 0xb19   :  { %4809 = vmatpush3.msra.mxu1 %v5851_v46  ;;  %v4767_v33 = vpop.f32.mrf.mxu0  ;;  %4814 = vmatprep.mubr.msk.f32.mxu1 %vm4952_vm0, %v4951_v0  ;;  %v4776_v34 = vpop.f32.mrf.mxu1 }
 0xb1a   :  { %4810 = vmatprep.subr.mxu1 %v4951_v0  ;;  %v3557_v33 = vld [vmem:[%s6299_s13 + $0x70] sm:$0xff]  ;;  %v3556_v34 = vld [vmem:[%s6299_s13 + $0x68] sm:$0xff] }
 0xb1b   :  { %4811 = vmatpush3.msra.mxu1 %v5853_v47 }
 0xb1c   :  { %4812 = vmatprep.subr.mxu1 %v4951_v0 }
 0xb1d   :  { %4813 = vmatpush3.msra.mxu1 %v5857_v48  ;;  %v2811_v36 = vpop.f32.mrf.mxu0 }
 0xb1e   :  { %4815 = vmatmul.mubr.msk.f32.vlgmr.msra.gmra.mxu1 %vm1974_vm3, %v3803_v35  ;;  %4806 = vmatmul.mubr.msk.f32.vlgmr.msra.gmra.mxu0 %vm74_vm1, %v2811_v36  ;;  %v3555_v35 = vld [vmem:[%s6299_s13 + $0x60] sm:$0xff]  ;;  %v3554_v36 = vld [vmem:[%s6299_s13 + $0x58] sm:$0xff] }
 0xb1f   :  { %4829 = vmatpush3.msra.mxu0 %v5851_v46  ;;  %4834 = vmatprep.mubr.msk.f32.mxu0 %vm4952_vm0, %v4951_v0  ;;  %v4796_v38 = vpop.f32.mrf.mxu0 }
 0xb20   :  { %4830 = vmatprep.subr.mxu0 %v4951_v0  ;;  %4817 = vmatprep.subr.mxu1 %v4951_v0  ;;  %v3552_v38 = vld [vmem:[%s6299_s13 + $0x48] sm:$0xff] }
 0xb21   :  { %4831 = vmatpush3.msra.mxu0 %v5853_v47  ;;  %4818 = vmatpush3.msra.mxu1 %v3808_v37  ;;  %v3553_v37 = vld [vmem:[%s6299_s13 + $0x50] sm:$0xff] }
 0xb22   :  { %4832 = vmatprep.subr.mxu0 %v4951_v0  ;;  %4819 = vmatprep.subr.mxu1 %v4951_v0 }
 0xb23   :  { %4833 = vmatpush3.msra.mxu0 %v5857_v48  ;;  %4825 = vmatprep.mubr.msk.f32.mxu1 %vm4952_vm0, %v4951_v0 }
 0xb24   :  { %4835 = vmatmul.mubr.msk.f32.vlgmr.msra.gmra.mxu0 %vm1974_vm3, %v3810_v39  ;;  %4837 = vmatprep.subr.mxu0 %v4951_v0  ;;  %v3551_v39 = vld [vmem:[%s6299_s13 + $0x40] sm:$0xff] }
 0xb25   :  { %4845 = vmatprep.mubr.msk.f32.mxu0 %vm4952_vm0, %v4951_v0  ;;  %4820 = vmatpush3.msra.mxu1 %v3807_v40  ;;  %v3550_v40 = vld [vmem:[%s6299_s13 + $0x38] sm:$0xff] }
 0xb26   :  { %4821 = vmatprep.subr.mxu1 %v4951_v0  ;;  %4838 = vmatpush3.msra.mxu0 %v3815_v43  ;;  %v3547_v43 = vld [vmem:[%s6299_s13 + $0x20] sm:$0xff] }
 0xb27   :  { %4822 = vmatpush3.msra.mxu1 %v3806_v41  ;;  %4839 = vmatprep.subr.mxu0 %v4951_v0  ;;  %v3549_v41 = vld [vmem:[%s6299_s13 + $0x30] sm:$0xff] }
 0xb28   :  { %4823 = vmatprep.subr.mxu1 %v4951_v0  ;;  %4840 = vmatpush3.msra.mxu0 %v3814_v44  ;;  %v3546_v44 = vld [vmem:[%s6299_s13 + $0x18] sm:$0xff] }
 0xb29   :  { %4824 = vmatpush3.msra.mxu1 %v3805_v42  ;;  %4841 = vmatprep.subr.mxu0 %v4951_v0  ;;  %v3548_v42 = vld [vmem:[%s6299_s13 + $0x28] sm:$0xff] }
 0xb2a   :  { %4848 = vmatprep.subr.mxu1 %v4951_v0  ;;  %4842 = vmatpush3.msra.mxu0 %v3813_v45  ;;  %v3825_v45 = vld [vmem:[%s6300_s10] ss:$0 sm:$0xff] }
 0xb2b   :  { %4843 = vmatprep.subr.mxu0 %v4951_v0 }
 0xb2c   :  { %4844 = vmatpush3.msra.mxu0 %v3812_v49 }
 0xb2d   :  { %4868 = vmatprep.subr.mxu0 %v4951_v0 }
 0xbd8   :  { %v2735_v51 = vpop.f32.mrf.mxu1 }
 0xbd9   :  { %v2739_v53 = vadd.f32 %v2735_v51, %v2585_v32  ;;  %v3558_v32 = vld [vmem:[%s6299_s13 + $0x78] sm:$0xff] }
 0xbda   :  { %v4787_v55 = vpop.f32.mrf.mxu1 }
 0xbde   :  { %v2965_v57 = vpop.f32.mrf.mxu1  ;;  %v2889_v59 = vpop.f32.mrf.mxu0 }
 0xbdf   :  { %v2893_v61 = vadd.f32 %v2889_v59, %v2739_v53  ;;  %4826 = vmatmul.mubr.msk.f32.vlgmr.msra.gmra.mxu1 %vm74_vm1, %v2965_v57  ;;  %v3545_v57 = vld [vmem:[%s6299_s13 + $0x10] sm:$0xff]  ;;  %v3544_v59 = vld [vmem:[%s6299_s13 + $0x8] sm:$0xff] }
 0xbe0   :  { %4849 = vmatpush3.msra.mxu1 %v5851_v46  ;;  %v4807_v63 = vpop.f32.mrf.mxu0  ;;  %4854 = vmatprep.mubr.msk.f32.mxu1 %vm4952_vm0, %v4951_v0  ;;  %v4816_v2 = vpop.f32.mrf.mxu1  ;;  %v3822_v46 = vld [vmem:[%s6293_s7 + $0x118] sm:$0xff] }
 0xbe1   :  { %4850 = vmatprep.subr.mxu1 %v4951_v0  ;;  %v3827_v63 = vld [vmem:[%s6301_s12] ss:$0 sm:$0xff] }
 0xbe2   :  { %4851 = vmatpush3.msra.mxu1 %v5853_v47 }
 0xbe3   :  { %4852 = vmatprep.subr.mxu1 %v4951_v0 }
 0xbe4   :  { %4853 = vmatpush3.msra.mxu1 %v5857_v48  ;;  %v3119_v6 = vpop.f32.mrf.mxu0  ;;  %v3821_v48 = vld [vmem:[%s6293_s7 + $0x110] sm:$0xff] }
 0xbe5   :  { %4855 = vmatmul.mubr.msk.f32.vlgmr.msra.gmra.mxu1 %vm1974_vm3, %v3817_v4  ;;  %4846 = vmatmul.mubr.msk.f32.vlgmr.msra.gmra.mxu0 %vm74_vm1, %v3119_v6 }
 0xbe6   :  { %4857 = vmatprep.subr.mxu1 %v4951_v0  ;;  %v4836_v47 = vpop.f32.mrf.mxu0  ;;  %4865 = vmatprep.mubr.msk.f32.mxu1 %vm4952_vm0, %v4951_v0 }
 0xbe7   :  { %4858 = vmatpush3.msra.mxu1 %v3822_v46  ;;  %4876 = vmatprep.mubr.msk.f32.mxu0 %vm4952_vm0, %v4951_v0  ;;  %v3828_v47 = vld [vmem:[%s6302_s14] ss:$0 sm:$0xff] }
 0xbe8   :  { %4859 = vmatprep.subr.mxu1 %v4951_v0  ;;  %4869 = vmatpush3.msra.mxu0 %v3367_v12 }
 0xbe9   :  { %4860 = vmatpush3.msra.mxu1 %v3821_v48  ;;  %4870 = vmatprep.subr.mxu0 %v4951_v0 }
 0xbea   :  { %4861 = vmatprep.subr.mxu1 %v4951_v0  ;;  %4871 = vmatpush3.msra.mxu0 %v3366_v52 }
 0xbeb   :  { %4862 = vmatpush3.msra.mxu1 %v3820_v10  ;;  %4872 = vmatprep.subr.mxu0 %v4951_v0 }
 0xbec   :  { %4863 = vmatprep.subr.mxu1 %v4951_v0  ;;  %4873 = vmatpush3.msra.mxu0 %v3365_v54 }
 0xbed   :  { %4864 = vmatpush3.msra.mxu1 %v3819_v11  ;;  %4874 = vmatprep.subr.mxu0 %v4951_v0 }
 0xbee   :  { %4879 = vmatprep.subr.mxu1 %v4951_v0  ;;  %4875 = vmatpush3.msra.mxu0 %v3364_v56 }
 0xbef   :  { %4914 = vmatprep.subr.mxu0 %v4951_v0 }
 0xc9f   :  { %v3043_v13 = vpop.f32.mrf.mxu1 }
 0xca0   :  { %v3047_v14 = vadd.f32 %v3043_v13, %v2893_v61  ;;  %v3543_v61 = vld [vmem:[%s6299_s13] sm:$0xff] }
 0xca1   :  { %v4827_v15 = vpop.f32.mrf.mxu1 }
 0xca5   :  { %v3273_v16 = vpop.f32.mrf.mxu1  ;;  %v3197_v17 = vpop.f32.mrf.mxu0 }
 0xca6   :  { %v3201_v18 = vadd.f32 %v3197_v17, %v3047_v14  ;;  %4866 = vmatmul.mubr.msk.f32.vlgmr.msra.gmra.mxu1 %vm74_vm1, %v3273_v16 }
 0xca7   :  { %v4856_v19 = vpop.f32.mrf.mxu1  ;;  %v4847_v50 = vpop.f32.mrf.mxu0  ;;  %4911 = vmatprep.mubr.msk.f32.mxu1 %vm4952_vm0, %v4951_v0  ;;  %4880 = vmatpush3.msra.mxu1 %v3464_v58 }
 0xca8   :  { %4881 = vmatprep.subr.mxu1 %v4951_v0 }
 0xca9   :  { %4882 = vmatpush3.msra.mxu1 %v3463_v60 }
 0xcaa   :  { %4883 = vmatprep.subr.mxu1 %v4951_v0 }
 0xcab   :  { %4884 = vmatpush3.msra.mxu1 %v3462_v62 }
 0xcac   :  { %4885 = vmatprep.subr.mxu1 %v4951_v0 }
 0xcad   :  { %4886 = vmatpush3.msra.mxu1 %v3461_v1 }
 0xcae   :  { %4887 = vmatprep.subr.mxu1 %v4951_v0 }
 0xcaf   :  { %4888 = vmatpush3.msra.mxu1 %v3460_v3 }
 0xcb0   :  { %4889 = vmatprep.subr.mxu1 %v4951_v0 }
 0xcb1   :  { %4890 = vmatpush3.msra.mxu1 %v3459_v5 }
 0xcb2   :  { %4891 = vmatprep.subr.mxu1 %v4951_v0 }
 0xcb3   :  { %4892 = vmatpush3.msra.mxu1 %v3458_v7 }
 0xcb4   :  { %4893 = vmatprep.subr.mxu1 %v4951_v0 }
 0xcb5   :  { %4894 = vmatpush3.msra.mxu1 %v3457_v8 }
 0xcb6   :  { %4895 = vmatprep.subr.mxu1 %v4951_v0 }
 0xcb7   :  { %4896 = vmatpush3.msra.mxu1 %v3456_v9 }
 0xcb8   :  { %4897 = vmatprep.subr.mxu1 %v4951_v0 }
 0xcb9   :  { %4898 = vmatpush3.msra.mxu1 %v3455_v20 }
 0xcba   :  { %4899 = vmatprep.subr.mxu1 %v4951_v0 }
 0xcbb   :  { %4900 = vmatpush3.msra.mxu1 %v3454_v21 }
 0xcbc   :  { %4901 = vmatprep.subr.mxu1 %v4951_v0 }
 0xcbd   :  { %4902 = vmatpush3.msra.mxu1 %v3453_v22 }
 0xcbe   :  { %4903 = vmatprep.subr.mxu1 %v4951_v0 }
 0xcbf   :  { %4904 = vmatpush3.msra.mxu1 %v3452_v23 }
 0xcc0   :  { %4905 = vmatprep.subr.mxu1 %v4951_v0 }
 0xcc1   :  { %4906 = vmatpush3.msra.mxu1 %v3451_v29 }
 0xcc2   :  { %4907 = vmatprep.subr.mxu1 %v4951_v0 }
 0xcc3   :  { %4908 = vmatpush3.msra.mxu1 %v3450_v30 }
 0xcc4   :  { %4909 = vmatprep.subr.mxu1 %v4951_v0 }
 0xcc5   :  { %4910 = vmatpush3.msra.mxu1 %v3449_v31 }
 0xd66   :  { %v3351_v24 = vpop.f32.mrf.mxu1 }
 0xd67   :  { %v3355_v26 = vadd.f32 %v3351_v24, %v3201_v18 }
 0xd68   :  { %v4867_v27 = vpop.f32.mrf.mxu1 }
 0xd69   :  { %v3363_v28 = vadd.f32 %v3824_v25, %v3355_v26 }
 0xd6b   :  { %4877 = vmatmul.mubr.msk.f32.vlgmr.msra.gmra.mxu0 %vm74_vm1, %v3363_v28 }
 0xd6c   :  { %4946 = vmatprep.mubr.msk.f32.mxu0 %vm4952_vm0, %v4951_v0  ;;  %4915 = vmatpush3.msra.mxu0 %v3558_v32 }
 0xd6d   :  { %4916 = vmatprep.subr.mxu0 %v4951_v0 }
 0xd6e   :  { %4917 = vmatpush3.msra.mxu0 %v3557_v33 }
 0xd6f   :  { %4918 = vmatprep.subr.mxu0 %v4951_v0 }
 0xd70   :  { %4919 = vmatpush3.msra.mxu0 %v3556_v34 }
 0xd71   :  { %4920 = vmatprep.subr.mxu0 %v4951_v0 }
 0xd72   :  { %4921 = vmatpush3.msra.mxu0 %v3555_v35 }
 0xd73   :  { %4922 = vmatprep.subr.mxu0 %v4951_v0 }
 0xd74   :  { %4923 = vmatpush3.msra.mxu0 %v3554_v36 }
 0xd75   :  { %4924 = vmatprep.subr.mxu0 %v4951_v0 }
 0xd76   :  { %4925 = vmatpush3.msra.mxu0 %v3553_v37 }
 0xd77   :  { %4926 = vmatprep.subr.mxu0 %v4951_v0 }
 0xd78   :  { %4927 = vmatpush3.msra.mxu0 %v3552_v38 }
 0xd79   :  { %4928 = vmatprep.subr.mxu0 %v4951_v0 }
 0xd7a   :  { %4929 = vmatpush3.msra.mxu0 %v3551_v39 }
 0xd7b   :  { %4930 = vmatprep.subr.mxu0 %v4951_v0 }
 0xd7c   :  { %4931 = vmatpush3.msra.mxu0 %v3550_v40 }
 0xd7d   :  { %4932 = vmatprep.subr.mxu0 %v4951_v0 }
 0xd7e   :  { %4933 = vmatpush3.msra.mxu0 %v3549_v41 }
 0xd7f   :  { %4934 = vmatprep.subr.mxu0 %v4951_v0 }
 0xd80   :  { %4935 = vmatpush3.msra.mxu0 %v3548_v42 }
 0xd81   :  { %4936 = vmatprep.subr.mxu0 %v4951_v0 }
 0xd82   :  { %4937 = vmatpush3.msra.mxu0 %v3547_v43 }
 0xd83   :  { %4938 = vmatprep.subr.mxu0 %v4951_v0 }
 0xd84   :  { %4939 = vmatpush3.msra.mxu0 %v3546_v44 }
 0xd85   :  { %4940 = vmatprep.subr.mxu0 %v4951_v0 }
 0xd86   :  { %4941 = vmatpush3.msra.mxu0 %v3545_v57 }
 0xd87   :  { %4942 = vmatprep.subr.mxu0 %v4951_v0 }
 0xd88   :  { %4943 = vmatpush3.msra.mxu0 %v3544_v59 }
 0xd89   :  { %4944 = vmatprep.subr.mxu0 %v4951_v0 }
 0xd8a   :  { %4945 = vmatpush3.msra.mxu0 %v3543_v61 }
 0xe2b   :  { %v3444_v49 = vpop.f32.mrf.mxu0 }
 0xe2c   :  { %v3445_v51 = vadd.f32 %v3825_v45, %v3444_v49 }
 0xe2d   :  { %v4878_v53 = vpop.f32.mrf.mxu0 }
 0xe2e   :  { %v3448_v55 = vmax.f32 %v3445_v51, 0.0 }
 0xe30   :  { %4912 = vmatmul.mubr.f32.vlgmr.msra.gmra.mxu1 %v3448_v55 }
 0xef0   :  { %v3538_v2 = vpop.f32.mrf.mxu1 }
 0xef1   :  { %v3539_v4 = vadd.f32 %v3827_v63, %v3538_v2 }
 0xef2   :  { %v4913_v6 = vpop.f32.mrf.mxu1 }
 0xef3   :  { %v3542_v46 = vmax.f32 %v3539_v4, 0.0 }
 0xef5   :  { %4947 = vmatmul.mubr.f32.vlgmr.msra.gmra.mxu0 %v3542_v46 }
 0xfb5   :  { %v3632_v48 = vpop.f32.mrf.mxu0 }
 0xfb6   :  { %v3633_v0 = vadd.f32 %v3828_v47, %v3632_v48 }
 0xfb7   :  { %v4948_v10 = vpop.f32.mrf.mxu0 }
 0xfb8   :  { %3636 = vst [vmem:[%s6303_s15] sm:$0xff] %v3633_v0 }

</bundles_post_ra>
